<compile_context>
chip_gen: v5e
topology: v5e:2x2
jax: 0.10.0
libtpu: 0.0.40
codegen_flags: <defaults>
</compile_context>

<pallas_src>
import functools

import jax
import jax.numpy as jnp
from jax.experimental import pallas as pl
from jax.experimental.pallas import tpu as pltpu


def _round_up(x, m):
    return (x + m - 1) // m * m


def _pick_tile_n(n, k, itemsize=2):
    """Lane tile for a (k, n) weight: biggest multiple-of-128 tile whose
    double-buffered weight slab stays under ~10 MiB and whose padding waste
    is at most 256 columns.  n <= 128 -> use the full (unpadded) width."""
    if n <= 128:
        return n, n
    for tn in (512, 384, 256):
        if 2 * k * tn * itemsize > 10 * 1024 * 1024:
            continue
        n_pad = _round_up(n, tn)
        if n_pad - n <= 256:
            return tn, n_pad
    return 128, _round_up(n, 128)


def _pick_tile_m(m):
    """Row tile: whole thing when small, 256-row tiles when large (bounds the
    resident x block on v7x and feeds its second TensorCore)."""
    return _round_up(m, 8) if m <= 512 else 256


# --------------------------------------------------------------------------
# Tiled linear (+bias, optional ReLU) kernel.
# Full-K contraction per grid step; grid is (M, N) with both axes "parallel".
# x: (M_pad, K)  w: (K, N_pad) pre-padded bf16  b: (1, N_pad) f32
# --------------------------------------------------------------------------
def _linear_kernel(x_ref, w_ref, b_ref, o_ref, *, apply_relu):
    acc = jnp.dot(x_ref[...], w_ref[...], preferred_element_type=jnp.float32)
    acc = acc + b_ref[...]
    if apply_relu:
        acc = jnp.maximum(acc, 0.0)
    o_ref[...] = acc.astype(o_ref.dtype)


def pallas_linear(x, w, b, tn, *, relu, out_dtype):
    """x: (M, K); w: (K, N_pad) pre-padded; b: (1, N_pad); N_pad % tn == 0.
    Returns the (M_pad, N_pad) padded result (callers keep activations padded
    through the chain and slice only at the very end)."""
    M, K = x.shape
    Kw, N_pad = w.shape
    assert K == Kw and N_pad % tn == 0
    if x.dtype != w.dtype:                      # no-op when wrapper pre-casts
        x = x.astype(w.dtype)

    tm = _pick_tile_m(M)
    M_pad = _round_up(M, tm)
    if M_pad != M:                              # no-op when wrapper pre-pads
        x = jnp.pad(x, ((0, M_pad - M), (0, 0)))

    return pl.pallas_call(
        functools.partial(_linear_kernel, apply_relu=relu),
        out_shape=jax.ShapeDtypeStruct((M_pad, N_pad), out_dtype),
        grid_spec=pltpu.PrefetchScalarGridSpec(
            num_scalar_prefetch=0,
            grid=(M_pad // tm, N_pad // tn),
            in_specs=[
                pl.BlockSpec((tm, K), lambda m, n: (m, 0)),
                pl.BlockSpec((K, tn), lambda m, n: (0, n)),
                pl.BlockSpec((1, tn), lambda m, n: (0, n)),
            ],
            out_specs=pl.BlockSpec((tm, tn), lambda m, n: (m, n)),
        ),
        compiler_params=pltpu.CompilerParams(
            dimension_semantics=("parallel", "parallel"),
            vmem_limit_bytes=32 * 1024 * 1024),
    )(x, w, b)


# --------------------------------------------------------------------------
# Fused GRU layer kernel (one batch tile per grid step):
#   1) hoisted input-gate matmul for the whole sequence:
#        gi = (T*tb, Fin) @ (Fin, 3Hp) + (b_ih + b_hh fused)  -> VMEM scratch
#   2) serial recurrence: only h @ W_hh_cat per timestep, h carried in f32 by
#      a fori_loop(unroll=True); outputs written bf16 per step.
# Gate order (r, z, n); n = tanh(gi_n + r*(gh_n + b_hn)); h0 = 0 (PyTorch GRU).
# --------------------------------------------------------------------------
def _gru_fused_kernel(x_ref, wih_ref, bi_ref, whh_ref, bhn_ref, out_ref, gi_ref):
    T, TB, Fin = x_ref.shape
    Hp = out_ref.shape[-1]
    threeHp = 3 * Hp

    # (T, TB, Fin) -> (T*TB, Fin): TB % 8 == 0, last dim untouched -> free.
    xin = x_ref[...].reshape(T * TB, Fin)
    gi = jnp.dot(xin, wih_ref[...], preferred_element_type=jnp.float32)
    gi = gi + bi_ref[...]                                    # (T*TB, 3Hp)
    gi_ref[...] = gi.reshape(T, TB, threeHp)

    b_hn = jnp.broadcast_to(bhn_ref[...], (TB, Hp))          # hoisted broadcast
    whh = whh_ref[...]                                       # (Hp, 3Hp) bf16

    def step(t, h):
        gh = jnp.dot(h.astype(whh.dtype), whh,
                     preferred_element_type=jnp.float32)     # (TB, 3Hp)
        gi_t = gi_ref[t]                                     # (TB, 3Hp)
        r = jax.nn.sigmoid(gi_t[:, :Hp] + gh[:, :Hp])
        z = jax.nn.sigmoid(gi_t[:, Hp:2 * Hp] + gh[:, Hp:2 * Hp])
        n = jnp.tanh(gi_t[:, 2 * Hp:] + r * (gh[:, 2 * Hp:] + b_hn))
        h_new = (1.0 - z) * n + z * h
        out_ref[t] = h_new.astype(out_ref.dtype)
        return h_new

    jax.lax.fori_loop(0, T, step, jnp.zeros((TB, Hp), jnp.float32), unroll=True)


def gru_layer(x, w_ih_cat, bi_cat, w_hh_cat, b_hn, tb):
    """x: (T, Bp, Fin) bf16, Bp % tb == 0.  Returns (T, Bp, Hp) bf16."""
    T, Bp, Fin = x.shape
    threeHp = w_hh_cat.shape[1]
    Hp = threeHp // 3
    assert Bp % tb == 0

    return pl.pallas_call(
        _gru_fused_kernel,
        out_shape=jax.ShapeDtypeStruct((T, Bp, Hp), jnp.bfloat16),
        grid_spec=pltpu.PrefetchScalarGridSpec(
            num_scalar_prefetch=0,
            grid=(Bp // tb,),
            in_specs=[
                pl.BlockSpec((T, tb, Fin), lambda b: (0, b, 0)),
                pl.BlockSpec((Fin, threeHp), lambda b: (0, 0)),
                pl.BlockSpec((1, threeHp), lambda b: (0, 0)),
                pl.BlockSpec((Hp, threeHp), lambda b: (0, 0)),
                pl.BlockSpec((1, Hp), lambda b: (0, 0)),
            ],
            out_specs=pl.BlockSpec((T, tb, Hp), lambda b: (0, b, 0)),
            scratch_shapes=[pltpu.VMEM((T, tb, threeHp), jnp.float32)],
        ),
        compiler_params=pltpu.CompilerParams(
            dimension_semantics=("parallel",),
            vmem_limit_bytes=32 * 1024 * 1024),
    )(x, w_ih_cat, bi_cat, w_hh_cat, b_hn)


# --------------------------------------------------------------------------
# Full forward pass (glue in plain JAX, hot paths in the kernels above).
# No weight-side padding / reshaping / concatenation happens here.
# --------------------------------------------------------------------------
def temporal_gru_forward(path2edge, params, *, window_width, horizon,
                         in_size, edge_num, hidden_size):
    F = in_size * edge_num
    # path2edge plays the role of inter_path_embedding(batch_graph)'s output.
    seq = path2edge.reshape(-1, window_width, F)                    # (B, W, F)
    B = seq.shape[0]
    T = window_width + horizon - 1
    pad = jnp.zeros((B, horizon - 1, F), seq.dtype)
    pad_seq = jnp.concatenate([seq, pad], axis=1)                   # torch.hstack on 3-D

    # Batch tile: sublane-dense, and >= 2 "parallel" grid steps when the batch
    # is big enough (keeps both v7x TensorCores busy).
    Bp = _round_up(B, 8)
    if Bp <= 16:
        tb = Bp
    else:
        tb = min(128, _round_up(Bp // 2, 8))
    Bp = _round_up(Bp, tb)

    x = jnp.transpose(pad_seq, (1, 0, 2)).astype(jnp.bfloat16)      # (T, B, F) time-major
    if Bp != B:
        x = jnp.pad(x, ((0, 0), (0, Bp - B), (0, 0)))               # extra rows discarded later

    for (w_ih_cat, w_hh_cat, bi_cat, b_hn) in params["gru"]:        # stacked GRU layers
        x = gru_layer(x, w_ih_cat, bi_cat, w_hh_cat, b_hn, tb)      # (T, Bp, Hp) bf16

    Hp = x.shape[-1]
    out = x[T - horizon:T, :B, :]                                   # (horizon, B, Hp)
    out = jnp.transpose(out, (1, 0, 2))                             # (B, horizon, Hp)
    out2d = out.reshape(B * horizon, Hp)                            # padded hidden cols are 0

    M = B * horizon
    M_work = _round_up(M, _pick_tile_m(M))
    if M_work != M:
        out2d = jnp.pad(out2d, ((0, M_work - M), (0, 0)))

    # pred MLP hidden layers: Linear+ReLU chain, activations stay padded bf16.
    h = out2d
    for (w, bias, tn) in params["pred"]:
        h = pallas_linear(h, w, bias, tn, relu=True, out_dtype=jnp.bfloat16)

    # Fused epilogue: relu(pred_last(h) + linear_trans(out2d))
    #   = relu(concat([h, out2d]) @ [w_last; w_trans] + b_last)
    # (linear_trans has bias=False in the reference module, so only b_last.)
    w_ep, b_ep, tn_ep = params["epilogue"]
    x_cat = jnp.concatenate([h, out2d], axis=1)
    res = pallas_linear(x_cat, w_ep, b_ep, tn_ep, relu=True, out_dtype=jnp.float32)
    return res[:M, :edge_num].reshape(B, horizon, edge_num)


# --------------------------------------------------------------------------
# One-time parameter prep: fuse/pad GRU weights, pre-pad pred-MLP weights to
# tile geometry (bf16), pre-shape biases, pre-concatenate the epilogue matrix.
# Padded hidden units / padded output columns receive zero weights & biases
# and stay exactly 0 through the whole network.
# NOTE: real PyTorch GRU weights (weight_ih_l*, (3H, in)) must be split,
# transposed to (3, in, H) and kept in (r, z, n) order before calling this.
# --------------------------------------------------------------------------
def prepare_params(raw, hidden_size):
    H = hidden_size
    Hp = _round_up(H, 128)
    prepped = {"gru": [], "pred": [], "epilogue": None}

    def pad_h_vec(v):
        return jnp.zeros((Hp,), jnp.float32).at[:H].set(v)

    # --- GRU layers (bf16 weights, f32 fused biases) ---
    for li, (w_ih, w_hh, b_ih, b_hh) in enumerate(raw["gru"]):
        in_dim = w_ih.shape[1]
        in_dim_pad = in_dim if li == 0 else Hp
        w_ih_p = jnp.zeros((3, in_dim_pad, Hp), jnp.float32).at[:, :in_dim, :H].set(w_ih)
        w_ih_cat = jnp.concatenate([w_ih_p[0], w_ih_p[1], w_ih_p[2]], axis=1)   # (in, 3Hp)
        w_hh_p = jnp.zeros((3, Hp, Hp), jnp.float32).at[:, :H, :H].set(w_hh)
        w_hh_cat = jnp.concatenate([w_hh_p[0], w_hh_p[1], w_hh_p[2]], axis=1)   # (Hp, 3Hp)
        bi_cat = jnp.concatenate([pad_h_vec(b_ih[0] + b_hh[0]),   # r: b_ir + b_hr
                                  pad_h_vec(b_ih[1] + b_hh[1]),   # z: b_iz + b_hz
                                  pad_h_vec(b_ih[2])]             # n: b_in only
                                 ).reshape(1, 3 * Hp)
        b_hn = pad_h_vec(b_hh[2]).reshape(1, Hp)                  # applied inside r*(...)
        prepped["gru"].append((w_ih_cat.astype(jnp.bfloat16),
                               w_hh_cat.astype(jnp.bfloat16),
                               bi_cat, b_hn))

    # --- pred MLP hidden layers (pre-padded bf16 weights, (1, N_pad) biases) ---
    k_pad, k_raw = Hp, H          # first layer consumes the Hp-wide GRU output
    for (w, b) in raw["pred"][:-1]:
        K, N = w.shape
        assert K == k_raw
        tn, n_pad = _pick_tile_n(N, k_pad)
        w_p = jnp.zeros((k_pad, n_pad), jnp.float32).at[:K, :N].set(w)
        b_p = jnp.zeros((n_pad,), jnp.float32).at[:N].set(b).reshape(1, n_pad)
        prepped["pred"].append((w_p.astype(jnp.bfloat16), b_p, tn))
        k_pad, k_raw = n_pad, N

    # --- fused epilogue: [w_last ; linear_trans] pre-concatenated ---
    w_last, b_last = raw["pred"][-1]
    K_last, E = w_last.shape
    assert K_last == k_raw
    tn, n_pad = _pick_tile_n(E, k_pad + Hp)
    w_ep = jnp.zeros((k_pad + Hp, n_pad), jnp.float32)
    w_ep = w_ep.at[:K_last, :E].set(w_last)                       # rows for h
    w_ep = w_ep.at[k_pad:k_pad + H, :E].set(raw["linear_trans"])  # rows for out2d
    b_ep = jnp.zeros((n_pad,), jnp.float32).at[:E].set(b_last).reshape(1, n_pad)
    prepped["epilogue"] = (w_ep.astype(jnp.bfloat16), b_ep, tn)
    return prepped


# --------------------------------------------------------------------------
# Deterministic synthetic parameter initialization (PyTorch-like uniform).
# --------------------------------------------------------------------------
def init_params(key, in_size, edge_num, hidden_size, num_layers):
    F = in_size * edge_num
    H = hidden_size
    params = {"gru": [], "pred": [], "linear_trans": None}
    k = key

    def nxt():
        nonlocal k
        k, sub = jax.random.split(k)
        return sub

    s = 1.0 / (H ** 0.5)
    for layer in range(num_layers):
        in_dim = F if layer == 0 else H
        w_ih = jax.random.uniform(nxt(), (3, in_dim, H), jnp.float32, -s, s)
        w_hh = jax.random.uniform(nxt(), (3, H, H), jnp.float32, -s, s)
        b_ih = jax.random.uniform(nxt(), (3, H), jnp.float32, -s, s)
        b_hh = jax.random.uniform(nxt(), (3, H), jnp.float32, -s, s)
        params["gru"].append((w_ih, w_hh, b_ih, b_hh))

    dims = [H, 4600, 4000, 3600, 3000, 2400, 1800, 1300, 1000, 650, edge_num]
    for i in range(len(dims) - 1):
        si = 1.0 / (dims[i] ** 0.5)
        w = jax.random.uniform(nxt(), (dims[i], dims[i + 1]), jnp.float32, -si, si)
        b = jax.random.uniform(nxt(), (dims[i + 1],), jnp.float32, -si, si)
        params["pred"].append((w, b))

    st = 1.0 / (H ** 0.5)
    params["linear_trans"] = jax.random.uniform(
        nxt(), (H, edge_num), jnp.float32, -st, st)
    return params


if __name__ == "__main__":
    in_size, edge_num = 4, 16
    hidden_size, num_layers = 32, 2
    window_width, horizon = 8, 3
    batch = 2

    key = jax.random.PRNGKey(0)
    pkey, xkey = jax.random.split(key)
    raw_params = init_params(pkey, in_size, edge_num, hidden_size, num_layers)
    params = prepare_params(raw_params, hidden_size)   # one-time, outside forward

    # stand-in for inter_path_embedding(batch_graph): (B, W, in_size*edge_num)
    path2edge = jax.random.normal(
        xkey, (batch, window_width, in_size * edge_num), jnp.float32)

    res = temporal_gru_forward(
        path2edge, params,
        window_width=window_width, horizon=horizon,
        in_size=in_size, edge_num=edge_num, hidden_size=hidden_size)
    res = jax.block_until_ready(res)
    assert res.shape == (batch, horizon, edge_num)
    assert bool(jnp.all(res >= 0.0))  # final ReLU
    print("KERNEL_OK")
</pallas_src>

<mosaic_0001>
module attributes {stable_mosaic.version = 11 : i64} {
  func.func @_gru_fused_kernel(%arg0: i32, %arg1: memref<10x8x64xbf16, #tpu.memory_space<vmem>>, %arg2: memref<64x384xbf16, #tpu.memory_space<vmem>>, %arg3: memref<1x384xf32, #tpu.memory_space<vmem>>, %arg4: memref<128x384xbf16, #tpu.memory_space<vmem>>, %arg5: memref<1x128xf32, #tpu.memory_space<vmem>>, %arg6: memref<10x8x128xbf16, #tpu.memory_space<vmem>>, %arg7: memref<10x8x384xf32, #tpu.memory_space<vmem>>) attributes {dimension_semantics = [#tpu.dimension_semantics<parallel>], iteration_bounds = array<i64: 1>, scalar_prefetch = 0 : i64, scratch_operands = 1 : i64, tpu.core_type = #tpu.core_type<tc>, window_params = [{transform_indices = @transform_0, window_bounds = array<i64: 10, 8, 64>}, {pipeline_mode = #tpu.pipeline_mode<synchronous>, transform_indices = @transform_1, window_bounds = array<i64: 64, 384>}, {pipeline_mode = #tpu.pipeline_mode<synchronous>, transform_indices = @transform_2, window_bounds = array<i64: 1, 384>}, {pipeline_mode = #tpu.pipeline_mode<synchronous>, transform_indices = @transform_3, window_bounds = array<i64: 128, 384>}, {pipeline_mode = #tpu.pipeline_mode<synchronous>, transform_indices = @transform_4, window_bounds = array<i64: 1, 128>}, {transform_indices = @transform_5, window_bounds = array<i64: 10, 8, 128>}]} {
    %c0 = arith.constant 0 : index
    %c0_0 = arith.constant 0 : index
    %c0_1 = arith.constant 0 : index
    %0 = vector.load %arg1[%c0, %c0_0, %c0_1] : memref<10x8x64xbf16, #tpu.memory_space<vmem>>, vector<10x8x64xbf16>
    %1 = vector.shape_cast %0 : vector<10x8x64xbf16> to vector<80x64xbf16>
    %c0_2 = arith.constant 0 : index
    %c0_3 = arith.constant 0 : index
    %2 = vector.load %arg2[%c0_2, %c0_3] : memref<64x384xbf16, #tpu.memory_space<vmem>>, vector<64x384xbf16>
    %cst = arith.constant dense<0.000000e+00> : vector<80x384xf32>
    %3 = tpu.matmul %1, %2, %cst {dimension_numbers = #tpu.dot_dimension_numbers<[1], [0], [0], [1], [0, 0, 1, 1], [], []>} : vector<80x64xbf16>, vector<64x384xbf16>, vector<80x384xf32> -> vector<80x384xf32>
    %c0_4 = arith.constant 0 : index
    %c0_5 = arith.constant 0 : index
    %4 = vector.load %arg3[%c0_4, %c0_5] : memref<1x384xf32, #tpu.memory_space<vmem>>, vector<1x384xf32>
    %5 = vector.broadcast %4 : vector<1x384xf32> to vector<80x384xf32>
    %6 = arith.addf %3, %5 : vector<80x384xf32>
    %7 = vector.shape_cast %6 : vector<80x384xf32> to vector<10x8x384xf32>
    %c0_6 = arith.constant 0 : index
    %c0_7 = arith.constant 0 : index
    %c0_8 = arith.constant 0 : index
    %8 = vector.load %arg7[%c0_6, %c0_7, %c0_8] : memref<10x8x384xf32, #tpu.memory_space<vmem>>, vector<10x8x384xf32>
    tpu.vector_store %arg7[%c0_6, %c0_7, %c0_8], %7 {strides = array<i32>} : memref<10x8x384xf32, #tpu.memory_space<vmem>>, vector<10x8x384xf32>,
    %c0_9 = arith.constant 0 : index
    %c0_10 = arith.constant 0 : index
    %9 = vector.load %arg5[%c0_9, %c0_10] : memref<1x128xf32, #tpu.memory_space<vmem>>, vector<1x128xf32>
    %10 = vector.shape_cast %9 : vector<1x128xf32> to vector<1x128xf32>
    %11 = vector.broadcast %10 : vector<1x128xf32> to vector<8x128xf32>
    %c0_11 = arith.constant 0 : index
    %c0_12 = arith.constant 0 : index
    %12 = vector.load %arg4[%c0_11, %c0_12] : memref<128x384xbf16, #tpu.memory_space<vmem>>, vector<128x384xbf16>
    %cst_13 = arith.constant 0.000000e+00 : f32
    %13 = vector.broadcast %cst_13 : f32 to vector<8x128xf32>
    %c0_i32 = arith.constant 0 : i32
    %14 = arith.truncf %13 : vector<8x128xf32> to vector<8x128xbf16>
    %cst_14 = arith.constant dense<0.000000e+00> : vector<8x384xf32>
    %15 = tpu.matmul %14, %12, %cst_14 {dimension_numbers = #tpu.dot_dimension_numbers<[1], [0], [0], [1], [0, 0, 1, 1], [], []>} : vector<8x128xbf16>, vector<128x384xbf16>, vector<8x384xf32> -> vector<8x384xf32>
    %16 = arith.index_cast %c0_i32 : i32 to index
    %c0_15 = arith.constant 0 : index
    %c0_16 = arith.constant 0 : index
    %17 = vector.load %arg7[%16, %c0_15, %c0_16] : memref<10x8x384xf32, #tpu.memory_space<vmem>>, vector<1x8x384xf32>
    %18 = vector.shape_cast %17 : vector<1x8x384xf32> to vector<8x384xf32>
    %19 = vector.extract_strided_slice %18 {offsets = [0, 0], sizes = [8, 128], strides = [1, 1]} : vector<8x384xf32> to vector<8x128xf32>
    %20 = vector.extract_strided_slice %15 {offsets = [0, 0], sizes = [8, 128], strides = [1, 1]} : vector<8x384xf32> to vector<8x128xf32>
    %21 = arith.addf %19, %20 : vector<8x128xf32>
    %22 = arith.negf %21 : vector<8x128xf32>
    %23 = math.exp %22 : vector<8x128xf32>
    %cst_17 = arith.constant 1.000000e+00 : f32
    %24 = vector.broadcast %cst_17 : f32 to vector<8x128xf32>
    %25 = arith.addf %24, %23 : vector<8x128xf32>
    %26 = arith.divf %24, %25 : vector<8x128xf32>
    %27 = vector.extract_strided_slice %18 {offsets = [0, 128], sizes = [8, 128], strides = [1, 1]} : vector<8x384xf32> to vector<8x128xf32>
    %28 = vector.extract_strided_slice %15 {offsets = [0, 128], sizes = [8, 128], strides = [1, 1]} : vector<8x384xf32> to vector<8x128xf32>
    %29 = arith.addf %27, %28 : vector<8x128xf32>
    %30 = arith.negf %29 : vector<8x128xf32>
    %31 = math.exp %30 : vector<8x128xf32>
    %cst_18 = arith.constant 1.000000e+00 : f32
    %32 = vector.broadcast %cst_18 : f32 to vector<8x128xf32>
    %33 = arith.addf %32, %31 : vector<8x128xf32>
    %34 = arith.divf %32, %33 : vector<8x128xf32>
    %35 = vector.extract_strided_slice %18 {offsets = [0, 256], sizes = [8, 128], strides = [1, 1]} : vector<8x384xf32> to vector<8x128xf32>
    %36 = vector.extract_strided_slice %15 {offsets = [0, 256], sizes = [8, 128], strides = [1, 1]} : vector<8x384xf32> to vector<8x128xf32>
    %37 = arith.addf %36, %11 : vector<8x128xf32>
    %38 = arith.mulf %26, %37 : vector<8x128xf32>
    %39 = arith.addf %35, %38 : vector<8x128xf32>
    %40 = math.tanh %39 : vector<8x128xf32>
    %cst_19 = arith.constant 1.000000e+00 : f32
    %41 = vector.broadcast %cst_19 : f32 to vector<8x128xf32>
    %42 = arith.subf %41, %34 : vector<8x128xf32>
    %43 = arith.mulf %42, %40 : vector<8x128xf32>
    %44 = arith.mulf %34, %13 : vector<8x128xf32>
    %45 = arith.addf %43, %44 : vector<8x128xf32>
    %46 = arith.truncf %45 : vector<8x128xf32> to vector<8x128xbf16>
    %47 = arith.index_cast %c0_i32 : i32 to index
    %c0_20 = arith.constant 0 : index
    %c0_21 = arith.constant 0 : index
    %48 = vector.load %arg6[%47, %c0_20, %c0_21] : memref<10x8x128xbf16, #tpu.memory_space<vmem>>, vector<1x8x128xbf16>
    %49 = vector.shape_cast %48 : vector<1x8x128xbf16> to vector<8x128xbf16>
    %50 = vector.shape_cast %46 : vector<8x128xbf16> to vector<1x8x128xbf16>
    tpu.vector_store %arg6[%47, %c0_20, %c0_21], %50 {strides = array<i32>} : memref<10x8x128xbf16, #tpu.memory_space<vmem>>, vector<1x8x128xbf16>,
    %c1_i32 = arith.constant 1 : i32
    %51 = arith.truncf %45 : vector<8x128xf32> to vector<8x128xbf16>
    %cst_22 = arith.constant dense<0.000000e+00> : vector<8x384xf32>
    %52 = tpu.matmul %51, %12, %cst_22 {dimension_numbers = #tpu.dot_dimension_numbers<[1], [0], [0], [1], [0, 0, 1, 1], [], []>} : vector<8x128xbf16>, vector<128x384xbf16>, vector<8x384xf32> -> vector<8x384xf32>
    %53 = arith.index_cast %c1_i32 : i32 to index
    %c0_23 = arith.constant 0 : index
    %c0_24 = arith.constant 0 : index
    %54 = vector.load %arg7[%53, %c0_23, %c0_24] : memref<10x8x384xf32, #tpu.memory_space<vmem>>, vector<1x8x384xf32>
    %55 = vector.shape_cast %54 : vector<1x8x384xf32> to vector<8x384xf32>
    %56 = vector.extract_strided_slice %55 {offsets = [0, 0], sizes = [8, 128], strides = [1, 1]} : vector<8x384xf32> to vector<8x128xf32>
    %57 = vector.extract_strided_slice %52 {offsets = [0, 0], sizes = [8, 128], strides = [1, 1]} : vector<8x384xf32> to vector<8x128xf32>
    %58 = arith.addf %56, %57 : vector<8x128xf32>
    %59 = arith.negf %58 : vector<8x128xf32>
    %60 = math.exp %59 : vector<8x128xf32>
    %cst_25 = arith.constant 1.000000e+00 : f32
    %61 = vector.broadcast %cst_25 : f32 to vector<8x128xf32>
    %62 = arith.addf %61, %60 : vector<8x128xf32>
    %63 = arith.divf %61, %62 : vector<8x128xf32>
    %64 = vector.extract_strided_slice %55 {offsets = [0, 128], sizes = [8, 128], strides = [1, 1]} : vector<8x384xf32> to vector<8x128xf32>
    %65 = vector.extract_strided_slice %52 {offsets = [0, 128], sizes = [8, 128], strides = [1, 1]} : vector<8x384xf32> to vector<8x128xf32>
    %66 = arith.addf %64, %65 : vector<8x128xf32>
    %67 = arith.negf %66 : vector<8x128xf32>
    %68 = math.exp %67 : vector<8x128xf32>
    %cst_26 = arith.constant 1.000000e+00 : f32
    %69 = vector.broadcast %cst_26 : f32 to vector<8x128xf32>
    %70 = arith.addf %69, %68 : vector<8x128xf32>
    %71 = arith.divf %69, %70 : vector<8x128xf32>
    %72 = vector.extract_strided_slice %55 {offsets = [0, 256], sizes = [8, 128], strides = [1, 1]} : vector<8x384xf32> to vector<8x128xf32>
    %73 = vector.extract_strided_slice %52 {offsets = [0, 256], sizes = [8, 128], strides = [1, 1]} : vector<8x384xf32> to vector<8x128xf32>
    %74 = arith.addf %73, %11 : vector<8x128xf32>
    %75 = arith.mulf %63, %74 : vector<8x128xf32>
    %76 = arith.addf %72, %75 : vector<8x128xf32>
    %77 = math.tanh %76 : vector<8x128xf32>
    %cst_27 = arith.constant 1.000000e+00 : f32
    %78 = vector.broadcast %cst_27 : f32 to vector<8x128xf32>
    %79 = arith.subf %78, %71 : vector<8x128xf32>
    %80 = arith.mulf %79, %77 : vector<8x128xf32>
    %81 = arith.mulf %71, %45 : vector<8x128xf32>
    %82 = arith.addf %80, %81 : vector<8x128xf32>
    %83 = arith.truncf %82 : vector<8x128xf32> to vector<8x128xbf16>
    %84 = arith.index_cast %c1_i32 : i32 to index
    %c0_28 = arith.constant 0 : index
    %c0_29 = arith.constant 0 : index
    %85 = vector.load %arg6[%84, %c0_28, %c0_29] : memref<10x8x128xbf16, #tpu.memory_space<vmem>>, vector<1x8x128xbf16>
    %86 = vector.shape_cast %85 : vector<1x8x128xbf16> to vector<8x128xbf16>
    %87 = vector.shape_cast %83 : vector<8x128xbf16> to vector<1x8x128xbf16>
    tpu.vector_store %arg6[%84, %c0_28, %c0_29], %87 {strides = array<i32>} : memref<10x8x128xbf16, #tpu.memory_space<vmem>>, vector<1x8x128xbf16>,
    %c2_i32 = arith.constant 2 : i32
    %88 = arith.truncf %82 : vector<8x128xf32> to vector<8x128xbf16>
    %cst_30 = arith.constant dense<0.000000e+00> : vector<8x384xf32>
    %89 = tpu.matmul %88, %12, %cst_30 {dimension_numbers = #tpu.dot_dimension_numbers<[1], [0], [0], [1], [0, 0, 1, 1], [], []>} : vector<8x128xbf16>, vector<128x384xbf16>, vector<8x384xf32> -> vector<8x384xf32>
    %90 = arith.index_cast %c2_i32 : i32 to index
    %c0_31 = arith.constant 0 : index
    %c0_32 = arith.constant 0 : index
    %91 = vector.load %arg7[%90, %c0_31, %c0_32] : memref<10x8x384xf32, #tpu.memory_space<vmem>>, vector<1x8x384xf32>
    %92 = vector.shape_cast %91 : vector<1x8x384xf32> to vector<8x384xf32>
    %93 = vector.extract_strided_slice %92 {offsets = [0, 0], sizes = [8, 128], strides = [1, 1]} : vector<8x384xf32> to vector<8x128xf32>
    %94 = vector.extract_strided_slice %89 {offsets = [0, 0], sizes = [8, 128], strides = [1, 1]} : vector<8x384xf32> to vector<8x128xf32>
    %95 = arith.addf %93, %94 : vector<8x128xf32>
    %96 = arith.negf %95 : vector<8x128xf32>
    %97 = math.exp %96 : vector<8x128xf32>
    %cst_33 = arith.constant 1.000000e+00 : f32
    %98 = vector.broadcast %cst_33 : f32 to vector<8x128xf32>
    %99 = arith.addf %98, %97 : vector<8x128xf32>
    %100 = arith.divf %98, %99 : vector<8x128xf32>
    %101 = vector.extract_strided_slice %92 {offsets = [0, 128], sizes = [8, 128], strides = [1, 1]} : vector<8x384xf32> to vector<8x128xf32>
    %102 = vector.extract_strided_slice %89 {offsets = [0, 128], sizes = [8, 128], strides = [1, 1]} : vector<8x384xf32> to vector<8x128xf32>
    %103 = arith.addf %101, %102 : vector<8x128xf32>
    %104 = arith.negf %103 : vector<8x128xf32>
    %105 = math.exp %104 : vector<8x128xf32>
    %cst_34 = arith.constant 1.000000e+00 : f32
    %106 = vector.broadcast %cst_34 : f32 to vector<8x128xf32>
    %107 = arith.addf %106, %105 : vector<8x128xf32>
    %108 = arith.divf %106, %107 : vector<8x128xf32>
    %109 = vector.extract_strided_slice %92 {offsets = [0, 256], sizes = [8, 128], strides = [1, 1]} : vector<8x384xf32> to vector<8x128xf32>
    %110 = vector.extract_strided_slice %89 {offsets = [0, 256], sizes = [8, 128], strides = [1, 1]} : vector<8x384xf32> to vector<8x128xf32>
    %111 = arith.addf %110, %11 : vector<8x128xf32>
    %112 = arith.mulf %100, %111 : vector<8x128xf32>
    %113 = arith.addf %109, %112 : vector<8x128xf32>
    %114 = math.tanh %113 : vector<8x128xf32>
    %cst_35 = arith.constant 1.000000e+00 : f32
    %115 = vector.broadcast %cst_35 : f32 to vector<8x128xf32>
    %116 = arith.subf %115, %108 : vector<8x128xf32>
    %117 = arith.mulf %116, %114 : vector<8x128xf32>
    %118 = arith.mulf %108, %82 : vector<8x128xf32>
    %119 = arith.addf %117, %118 : vector<8x128xf32>
    %120 = arith.truncf %119 : vector<8x128xf32> to vector<8x128xbf16>
    %121 = arith.index_cast %c2_i32 : i32 to index
    %c0_36 = arith.constant 0 : index
    %c0_37 = arith.constant 0 : index
    %122 = vector.load %arg6[%121, %c0_36, %c0_37] : memref<10x8x128xbf16, #tpu.memory_space<vmem>>, vector<1x8x128xbf16>
    %123 = vector.shape_cast %122 : vector<1x8x128xbf16> to vector<8x128xbf16>
    %124 = vector.shape_cast %120 : vector<8x128xbf16> to vector<1x8x128xbf16>
    tpu.vector_store %arg6[%121, %c0_36, %c0_37], %124 {strides = array<i32>} : memref<10x8x128xbf16, #tpu.memory_space<vmem>>, vector<1x8x128xbf16>,
    %c3_i32 = arith.constant 3 : i32
    %125 = arith.truncf %119 : vector<8x128xf32> to vector<8x128xbf16>
    %cst_38 = arith.constant dense<0.000000e+00> : vector<8x384xf32>
    %126 = tpu.matmul %125, %12, %cst_38 {dimension_numbers = #tpu.dot_dimension_numbers<[1], [0], [0], [1], [0, 0, 1, 1], [], []>} : vector<8x128xbf16>, vector<128x384xbf16>, vector<8x384xf32> -> vector<8x384xf32>
    %127 = arith.index_cast %c3_i32 : i32 to index
    %c0_39 = arith.constant 0 : index
    %c0_40 = arith.constant 0 : index
    %128 = vector.load %arg7[%127, %c0_39, %c0_40] : memref<10x8x384xf32, #tpu.memory_space<vmem>>, vector<1x8x384xf32>
    %129 = vector.shape_cast %128 : vector<1x8x384xf32> to vector<8x384xf32>
    %130 = vector.extract_strided_slice %129 {offsets = [0, 0], sizes = [8, 128], strides = [1, 1]} : vector<8x384xf32> to vector<8x128xf32>
    %131 = vector.extract_strided_slice %126 {offsets = [0, 0], sizes = [8, 128], strides = [1, 1]} : vector<8x384xf32> to vector<8x128xf32>
    %132 = arith.addf %130, %131 : vector<8x128xf32>
    %133 = arith.negf %132 : vector<8x128xf32>
    %134 = math.exp %133 : vector<8x128xf32>
    %cst_41 = arith.constant 1.000000e+00 : f32
    %135 = vector.broadcast %cst_41 : f32 to vector<8x128xf32>
    %136 = arith.addf %135, %134 : vector<8x128xf32>
    %137 = arith.divf %135, %136 : vector<8x128xf32>
    %138 = vector.extract_strided_slice %129 {offsets = [0, 128], sizes = [8, 128], strides = [1, 1]} : vector<8x384xf32> to vector<8x128xf32>
    %139 = vector.extract_strided_slice %126 {offsets = [0, 128], sizes = [8, 128], strides = [1, 1]} : vector<8x384xf32> to vector<8x128xf32>
    %140 = arith.addf %138, %139 : vector<8x128xf32>
    %141 = arith.negf %140 : vector<8x128xf32>
    %142 = math.exp %141 : vector<8x128xf32>
    %cst_42 = arith.constant 1.000000e+00 : f32
    %143 = vector.broadcast %cst_42 : f32 to vector<8x128xf32>
    %144 = arith.addf %143, %142 : vector<8x128xf32>
    %145 = arith.divf %143, %144 : vector<8x128xf32>
    %146 = vector.extract_strided_slice %129 {offsets = [0, 256], sizes = [8, 128], strides = [1, 1]} : vector<8x384xf32> to vector<8x128xf32>
    %147 = vector.extract_strided_slice %126 {offsets = [0, 256], sizes = [8, 128], strides = [1, 1]} : vector<8x384xf32> to vector<8x128xf32>
    %148 = arith.addf %147, %11 : vector<8x128xf32>
    %149 = arith.mulf %137, %148 : vector<8x128xf32>
    %150 = arith.addf %146, %149 : vector<8x128xf32>
    %151 = math.tanh %150 : vector<8x128xf32>
    %cst_43 = arith.constant 1.000000e+00 : f32
    %152 = vector.broadcast %cst_43 : f32 to vector<8x128xf32>
    %153 = arith.subf %152, %145 : vector<8x128xf32>
    %154 = arith.mulf %153, %151 : vector<8x128xf32>
    %155 = arith.mulf %145, %119 : vector<8x128xf32>
    %156 = arith.addf %154, %155 : vector<8x128xf32>
    %157 = arith.truncf %156 : vector<8x128xf32> to vector<8x128xbf16>
    %158 = arith.index_cast %c3_i32 : i32 to index
    %c0_44 = arith.constant 0 : index
    %c0_45 = arith.constant 0 : index
    %159 = vector.load %arg6[%158, %c0_44, %c0_45] : memref<10x8x128xbf16, #tpu.memory_space<vmem>>, vector<1x8x128xbf16>
    %160 = vector.shape_cast %159 : vector<1x8x128xbf16> to vector<8x128xbf16>
    %161 = vector.shape_cast %157 : vector<8x128xbf16> to vector<1x8x128xbf16>
    tpu.vector_store %arg6[%158, %c0_44, %c0_45], %161 {strides = array<i32>} : memref<10x8x128xbf16, #tpu.memory_space<vmem>>, vector<1x8x128xbf16>,
    %c4_i32 = arith.constant 4 : i32
    %162 = arith.truncf %156 : vector<8x128xf32> to vector<8x128xbf16>
    %cst_46 = arith.constant dense<0.000000e+00> : vector<8x384xf32>
    %163 = tpu.matmul %162, %12, %cst_46 {dimension_numbers = #tpu.dot_dimension_numbers<[1], [0], [0], [1], [0, 0, 1, 1], [], []>} : vector<8x128xbf16>, vector<128x384xbf16>, vector<8x384xf32> -> vector<8x384xf32>
    %164 = arith.index_cast %c4_i32 : i32 to index
    %c0_47 = arith.constant 0 : index
    %c0_48 = arith.constant 0 : index
    %165 = vector.load %arg7[%164, %c0_47, %c0_48] : memref<10x8x384xf32, #tpu.memory_space<vmem>>, vector<1x8x384xf32>
    %166 = vector.shape_cast %165 : vector<1x8x384xf32> to vector<8x384xf32>
    %167 = vector.extract_strided_slice %166 {offsets = [0, 0], sizes = [8, 128], strides = [1, 1]} : vector<8x384xf32> to vector<8x128xf32>
    %168 = vector.extract_strided_slice %163 {offsets = [0, 0], sizes = [8, 128], strides = [1, 1]} : vector<8x384xf32> to vector<8x128xf32>
    %169 = arith.addf %167, %168 : vector<8x128xf32>
    %170 = arith.negf %169 : vector<8x128xf32>
    %171 = math.exp %170 : vector<8x128xf32>
    %cst_49 = arith.constant 1.000000e+00 : f32
    %172 = vector.broadcast %cst_49 : f32 to vector<8x128xf32>
    %173 = arith.addf %172, %171 : vector<8x128xf32>
    %174 = arith.divf %172, %173 : vector<8x128xf32>
    %175 = vector.extract_strided_slice %166 {offsets = [0, 128], sizes = [8, 128], strides = [1, 1]} : vector<8x384xf32> to vector<8x128xf32>
    %176 = vector.extract_strided_slice %163 {offsets = [0, 128], sizes = [8, 128], strides = [1, 1]} : vector<8x384xf32> to vector<8x128xf32>
    %177 = arith.addf %175, %176 : vector<8x128xf32>
    %178 = arith.negf %177 : vector<8x128xf32>
    %179 = math.exp %178 : vector<8x128xf32>
    %cst_50 = arith.constant 1.000000e+00 : f32
    %180 = vector.broadcast %cst_50 : f32 to vector<8x128xf32>
    %181 = arith.addf %180, %179 : vector<8x128xf32>
    %182 = arith.divf %180, %181 : vector<8x128xf32>
    %183 = vector.extract_strided_slice %166 {offsets = [0, 256], sizes = [8, 128], strides = [1, 1]} : vector<8x384xf32> to vector<8x128xf32>
    %184 = vector.extract_strided_slice %163 {offsets = [0, 256], sizes = [8, 128], strides = [1, 1]} : vector<8x384xf32> to vector<8x128xf32>
    %185 = arith.addf %184, %11 : vector<8x128xf32>
    %186 = arith.mulf %174, %185 : vector<8x128xf32>
    %187 = arith.addf %183, %186 : vector<8x128xf32>
    %188 = math.tanh %187 : vector<8x128xf32>
    %cst_51 = arith.constant 1.000000e+00 : f32
    %189 = vector.broadcast %cst_51 : f32 to vector<8x128xf32>
    %190 = arith.subf %189, %182 : vector<8x128xf32>
    %191 = arith.mulf %190, %188 : vector<8x128xf32>
    %192 = arith.mulf %182, %156 : vector<8x128xf32>
    %193 = arith.addf %191, %192 : vector<8x128xf32>
    %194 = arith.truncf %193 : vector<8x128xf32> to vector<8x128xbf16>
    %195 = arith.index_cast %c4_i32 : i32 to index
    %c0_52 = arith.constant 0 : index
    %c0_53 = arith.constant 0 : index
    %196 = vector.load %arg6[%195, %c0_52, %c0_53] : memref<10x8x128xbf16, #tpu.memory_space<vmem>>, vector<1x8x128xbf16>
    %197 = vector.shape_cast %196 : vector<1x8x128xbf16> to vector<8x128xbf16>
    %198 = vector.shape_cast %194 : vector<8x128xbf16> to vector<1x8x128xbf16>
    tpu.vector_store %arg6[%195, %c0_52, %c0_53], %198 {strides = array<i32>} : memref<10x8x128xbf16, #tpu.memory_space<vmem>>, vector<1x8x128xbf16>,
    %c5_i32 = arith.constant 5 : i32
    %199 = arith.truncf %193 : vector<8x128xf32> to vector<8x128xbf16>
    %cst_54 = arith.constant dense<0.000000e+00> : vector<8x384xf32>
    %200 = tpu.matmul %199, %12, %cst_54 {dimension_numbers = #tpu.dot_dimension_numbers<[1], [0], [0], [1], [0, 0, 1, 1], [], []>} : vector<8x128xbf16>, vector<128x384xbf16>, vector<8x384xf32> -> vector<8x384xf32>
    %201 = arith.index_cast %c5_i32 : i32 to index
    %c0_55 = arith.constant 0 : index
    %c0_56 = arith.constant 0 : index
    %202 = vector.load %arg7[%201, %c0_55, %c0_56] : memref<10x8x384xf32, #tpu.memory_space<vmem>>, vector<1x8x384xf32>
    %203 = vector.shape_cast %202 : vector<1x8x384xf32> to vector<8x384xf32>
    %204 = vector.extract_strided_slice %203 {offsets = [0, 0], sizes = [8, 128], strides = [1, 1]} : vector<8x384xf32> to vector<8x128xf32>
    %205 = vector.extract_strided_slice %200 {offsets = [0, 0], sizes = [8, 128], strides = [1, 1]} : vector<8x384xf32> to vector<8x128xf32>
    %206 = arith.addf %204, %205 : vector<8x128xf32>
    %207 = arith.negf %206 : vector<8x128xf32>
    %208 = math.exp %207 : vector<8x128xf32>
    %cst_57 = arith.constant 1.000000e+00 : f32
    %209 = vector.broadcast %cst_57 : f32 to vector<8x128xf32>
    %210 = arith.addf %209, %208 : vector<8x128xf32>
    %211 = arith.divf %209, %210 : vector<8x128xf32>
    %212 = vector.extract_strided_slice %203 {offsets = [0, 128], sizes = [8, 128], strides = [1, 1]} : vector<8x384xf32> to vector<8x128xf32>
    %213 = vector.extract_strided_slice %200 {offsets = [0, 128], sizes = [8, 128], strides = [1, 1]} : vector<8x384xf32> to vector<8x128xf32>
    %214 = arith.addf %212, %213 : vector<8x128xf32>
    %215 = arith.negf %214 : vector<8x128xf32>
    %216 = math.exp %215 : vector<8x128xf32>
    %cst_58 = arith.constant 1.000000e+00 : f32
    %217 = vector.broadcast %cst_58 : f32 to vector<8x128xf32>
    %218 = arith.addf %217, %216 : vector<8x128xf32>
    %219 = arith.divf %217, %218 : vector<8x128xf32>
    %220 = vector.extract_strided_slice %203 {offsets = [0, 256], sizes = [8, 128], strides = [1, 1]} : vector<8x384xf32> to vector<8x128xf32>
    %221 = vector.extract_strided_slice %200 {offsets = [0, 256], sizes = [8, 128], strides = [1, 1]} : vector<8x384xf32> to vector<8x128xf32>
    %222 = arith.addf %221, %11 : vector<8x128xf32>
    %223 = arith.mulf %211, %222 : vector<8x128xf32>
    %224 = arith.addf %220, %223 : vector<8x128xf32>
    %225 = math.tanh %224 : vector<8x128xf32>
    %cst_59 = arith.constant 1.000000e+00 : f32
    %226 = vector.broadcast %cst_59 : f32 to vector<8x128xf32>
    %227 = arith.subf %226, %219 : vector<8x128xf32>
    %228 = arith.mulf %227, %225 : vector<8x128xf32>
    %229 = arith.mulf %219, %193 : vector<8x128xf32>
    %230 = arith.addf %228, %229 : vector<8x128xf32>
    %231 = arith.truncf %230 : vector<8x128xf32> to vector<8x128xbf16>
    %232 = arith.index_cast %c5_i32 : i32 to index
    %c0_60 = arith.constant 0 : index
    %c0_61 = arith.constant 0 : index
    %233 = vector.load %arg6[%232, %c0_60, %c0_61] : memref<10x8x128xbf16, #tpu.memory_space<vmem>>, vector<1x8x128xbf16>
    %234 = vector.shape_cast %233 : vector<1x8x128xbf16> to vector<8x128xbf16>
    %235 = vector.shape_cast %231 : vector<8x128xbf16> to vector<1x8x128xbf16>
    tpu.vector_store %arg6[%232, %c0_60, %c0_61], %235 {strides = array<i32>} : memref<10x8x128xbf16, #tpu.memory_space<vmem>>, vector<1x8x128xbf16>,
    %c6_i32 = arith.constant 6 : i32
    %236 = arith.truncf %230 : vector<8x128xf32> to vector<8x128xbf16>
    %cst_62 = arith.constant dense<0.000000e+00> : vector<8x384xf32>
    %237 = tpu.matmul %236, %12, %cst_62 {dimension_numbers = #tpu.dot_dimension_numbers<[1], [0], [0], [1], [0, 0, 1, 1], [], []>} : vector<8x128xbf16>, vector<128x384xbf16>, vector<8x384xf32> -> vector<8x384xf32>
    %238 = arith.index_cast %c6_i32 : i32 to index
    %c0_63 = arith.constant 0 : index
    %c0_64 = arith.constant 0 : index
    %239 = vector.load %arg7[%238, %c0_63, %c0_64] : memref<10x8x384xf32, #tpu.memory_space<vmem>>, vector<1x8x384xf32>
    %240 = vector.shape_cast %239 : vector<1x8x384xf32> to vector<8x384xf32>
    %241 = vector.extract_strided_slice %240 {offsets = [0, 0], sizes = [8, 128], strides = [1, 1]} : vector<8x384xf32> to vector<8x128xf32>
    %242 = vector.extract_strided_slice %237 {offsets = [0, 0], sizes = [8, 128], strides = [1, 1]} : vector<8x384xf32> to vector<8x128xf32>
    %243 = arith.addf %241, %242 : vector<8x128xf32>
    %244 = arith.negf %243 : vector<8x128xf32>
    %245 = math.exp %244 : vector<8x128xf32>
    %cst_65 = arith.constant 1.000000e+00 : f32
    %246 = vector.broadcast %cst_65 : f32 to vector<8x128xf32>
    %247 = arith.addf %246, %245 : vector<8x128xf32>
    %248 = arith.divf %246, %247 : vector<8x128xf32>
    %249 = vector.extract_strided_slice %240 {offsets = [0, 128], sizes = [8, 128], strides = [1, 1]} : vector<8x384xf32> to vector<8x128xf32>
    %250 = vector.extract_strided_slice %237 {offsets = [0, 128], sizes = [8, 128], strides = [1, 1]} : vector<8x384xf32> to vector<8x128xf32>
    %251 = arith.addf %249, %250 : vector<8x128xf32>
    %252 = arith.negf %251 : vector<8x128xf32>
    %253 = math.exp %252 : vector<8x128xf32>
    %cst_66 = arith.constant 1.000000e+00 : f32
    %254 = vector.broadcast %cst_66 : f32 to vector<8x128xf32>
    %255 = arith.addf %254, %253 : vector<8x128xf32>
    %256 = arith.divf %254, %255 : vector<8x128xf32>
    %257 = vector.extract_strided_slice %240 {offsets = [0, 256], sizes = [8, 128], strides = [1, 1]} : vector<8x384xf32> to vector<8x128xf32>
    %258 = vector.extract_strided_slice %237 {offsets = [0, 256], sizes = [8, 128], strides = [1, 1]} : vector<8x384xf32> to vector<8x128xf32>
    %259 = arith.addf %258, %11 : vector<8x128xf32>
    %260 = arith.mulf %248, %259 : vector<8x128xf32>
    %261 = arith.addf %257, %260 : vector<8x128xf32>
    %262 = math.tanh %261 : vector<8x128xf32>
    %cst_67 = arith.constant 1.000000e+00 : f32
    %263 = vector.broadcast %cst_67 : f32 to vector<8x128xf32>
    %264 = arith.subf %263, %256 : vector<8x128xf32>
    %265 = arith.mulf %264, %262 : vector<8x128xf32>
    %266 = arith.mulf %256, %230 : vector<8x128xf32>
    %267 = arith.addf %265, %266 : vector<8x128xf32>
    %268 = arith.truncf %267 : vector<8x128xf32> to vector<8x128xbf16>
    %269 = arith.index_cast %c6_i32 : i32 to index
    %c0_68 = arith.constant 0 : index
    %c0_69 = arith.constant 0 : index
    %270 = vector.load %arg6[%269, %c0_68, %c0_69] : memref<10x8x128xbf16, #tpu.memory_space<vmem>>, vector<1x8x128xbf16>
    %271 = vector.shape_cast %270 : vector<1x8x128xbf16> to vector<8x128xbf16>
    %272 = vector.shape_cast %268 : vector<8x128xbf16> to vector<1x8x128xbf16>
    tpu.vector_store %arg6[%269, %c0_68, %c0_69], %272 {strides = array<i32>} : memref<10x8x128xbf16, #tpu.memory_space<vmem>>, vector<1x8x128xbf16>,
    %c7_i32 = arith.constant 7 : i32
    %273 = arith.truncf %267 : vector<8x128xf32> to vector<8x128xbf16>
    %cst_70 = arith.constant dense<0.000000e+00> : vector<8x384xf32>
    %274 = tpu.matmul %273, %12, %cst_70 {dimension_numbers = #tpu.dot_dimension_numbers<[1], [0], [0], [1], [0, 0, 1, 1], [], []>} : vector<8x128xbf16>, vector<128x384xbf16>, vector<8x384xf32> -> vector<8x384xf32>
    %275 = arith.index_cast %c7_i32 : i32 to index
    %c0_71 = arith.constant 0 : index
    %c0_72 = arith.constant 0 : index
    %276 = vector.load %arg7[%275, %c0_71, %c0_72] : memref<10x8x384xf32, #tpu.memory_space<vmem>>, vector<1x8x384xf32>
    %277 = vector.shape_cast %276 : vector<1x8x384xf32> to vector<8x384xf32>
    %278 = vector.extract_strided_slice %277 {offsets = [0, 0], sizes = [8, 128], strides = [1, 1]} : vector<8x384xf32> to vector<8x128xf32>
    %279 = vector.extract_strided_slice %274 {offsets = [0, 0], sizes = [8, 128], strides = [1, 1]} : vector<8x384xf32> to vector<8x128xf32>
    %280 = arith.addf %278, %279 : vector<8x128xf32>
    %281 = arith.negf %280 : vector<8x128xf32>
    %282 = math.exp %281 : vector<8x128xf32>
    %cst_73 = arith.constant 1.000000e+00 : f32
    %283 = vector.broadcast %cst_73 : f32 to vector<8x128xf32>
    %284 = arith.addf %283, %282 : vector<8x128xf32>
    %285 = arith.divf %283, %284 : vector<8x128xf32>
    %286 = vector.extract_strided_slice %277 {offsets = [0, 128], sizes = [8, 128], strides = [1, 1]} : vector<8x384xf32> to vector<8x128xf32>
    %287 = vector.extract_strided_slice %274 {offsets = [0, 128], sizes = [8, 128], strides = [1, 1]} : vector<8x384xf32> to vector<8x128xf32>
    %288 = arith.addf %286, %287 : vector<8x128xf32>
    %289 = arith.negf %288 : vector<8x128xf32>
    %290 = math.exp %289 : vector<8x128xf32>
    %cst_74 = arith.constant 1.000000e+00 : f32
    %291 = vector.broadcast %cst_74 : f32 to vector<8x128xf32>
    %292 = arith.addf %291, %290 : vector<8x128xf32>
    %293 = arith.divf %291, %292 : vector<8x128xf32>
    %294 = vector.extract_strided_slice %277 {offsets = [0, 256], sizes = [8, 128], strides = [1, 1]} : vector<8x384xf32> to vector<8x128xf32>
    %295 = vector.extract_strided_slice %274 {offsets = [0, 256], sizes = [8, 128], strides = [1, 1]} : vector<8x384xf32> to vector<8x128xf32>
    %296 = arith.addf %295, %11 : vector<8x128xf32>
    %297 = arith.mulf %285, %296 : vector<8x128xf32>
    %298 = arith.addf %294, %297 : vector<8x128xf32>
    %299 = math.tanh %298 : vector<8x128xf32>
    %cst_75 = arith.constant 1.000000e+00 : f32
    %300 = vector.broadcast %cst_75 : f32 to vector<8x128xf32>
    %301 = arith.subf %300, %293 : vector<8x128xf32>
    %302 = arith.mulf %301, %299 : vector<8x128xf32>
    %303 = arith.mulf %293, %267 : vector<8x128xf32>
    %304 = arith.addf %302, %303 : vector<8x128xf32>
    %305 = arith.truncf %304 : vector<8x128xf32> to vector<8x128xbf16>
    %306 = arith.index_cast %c7_i32 : i32 to index
    %c0_76 = arith.constant 0 : index
    %c0_77 = arith.constant 0 : index
    %307 = vector.load %arg6[%306, %c0_76, %c0_77] : memref<10x8x128xbf16, #tpu.memory_space<vmem>>, vector<1x8x128xbf16>
    %308 = vector.shape_cast %307 : vector<1x8x128xbf16> to vector<8x128xbf16>
    %309 = vector.shape_cast %305 : vector<8x128xbf16> to vector<1x8x128xbf16>
    tpu.vector_store %arg6[%306, %c0_76, %c0_77], %309 {strides = array<i32>} : memref<10x8x128xbf16, #tpu.memory_space<vmem>>, vector<1x8x128xbf16>,
    %c8_i32 = arith.constant 8 : i32
    %310 = arith.truncf %304 : vector<8x128xf32> to vector<8x128xbf16>
    %cst_78 = arith.constant dense<0.000000e+00> : vector<8x384xf32>
    %311 = tpu.matmul %310, %12, %cst_78 {dimension_numbers = #tpu.dot_dimension_numbers<[1], [0], [0], [1], [0, 0, 1, 1], [], []>} : vector<8x128xbf16>, vector<128x384xbf16>, vector<8x384xf32> -> vector<8x384xf32>
    %312 = arith.index_cast %c8_i32 : i32 to index
    %c0_79 = arith.constant 0 : index
    %c0_80 = arith.constant 0 : index
    %313 = vector.load %arg7[%312, %c0_79, %c0_80] : memref<10x8x384xf32, #tpu.memory_space<vmem>>, vector<1x8x384xf32>
    %314 = vector.shape_cast %313 : vector<1x8x384xf32> to vector<8x384xf32>
    %315 = vector.extract_strided_slice %314 {offsets = [0, 0], sizes = [8, 128], strides = [1, 1]} : vector<8x384xf32> to vector<8x128xf32>
    %316 = vector.extract_strided_slice %311 {offsets = [0, 0], sizes = [8, 128], strides = [1, 1]} : vector<8x384xf32> to vector<8x128xf32>
    %317 = arith.addf %315, %316 : vector<8x128xf32>
    %318 = arith.negf %317 : vector<8x128xf32>
    %319 = math.exp %318 : vector<8x128xf32>
    %cst_81 = arith.constant 1.000000e+00 : f32
    %320 = vector.broadcast %cst_81 : f32 to vector<8x128xf32>
    %321 = arith.addf %320, %319 : vector<8x128xf32>
    %322 = arith.divf %320, %321 : vector<8x128xf32>
    %323 = vector.extract_strided_slice %314 {offsets = [0, 128], sizes = [8, 128], strides = [1, 1]} : vector<8x384xf32> to vector<8x128xf32>
    %324 = vector.extract_strided_slice %311 {offsets = [0, 128], sizes = [8, 128], strides = [1, 1]} : vector<8x384xf32> to vector<8x128xf32>
    %325 = arith.addf %323, %324 : vector<8x128xf32>
    %326 = arith.negf %325 : vector<8x128xf32>
    %327 = math.exp %326 : vector<8x128xf32>
    %cst_82 = arith.constant 1.000000e+00 : f32
    %328 = vector.broadcast %cst_82 : f32 to vector<8x128xf32>
    %329 = arith.addf %328, %327 : vector<8x128xf32>
    %330 = arith.divf %328, %329 : vector<8x128xf32>
    %331 = vector.extract_strided_slice %314 {offsets = [0, 256], sizes = [8, 128], strides = [1, 1]} : vector<8x384xf32> to vector<8x128xf32>
    %332 = vector.extract_strided_slice %311 {offsets = [0, 256], sizes = [8, 128], strides = [1, 1]} : vector<8x384xf32> to vector<8x128xf32>
    %333 = arith.addf %332, %11 : vector<8x128xf32>
    %334 = arith.mulf %322, %333 : vector<8x128xf32>
    %335 = arith.addf %331, %334 : vector<8x128xf32>
    %336 = math.tanh %335 : vector<8x128xf32>
    %cst_83 = arith.constant 1.000000e+00 : f32
    %337 = vector.broadcast %cst_83 : f32 to vector<8x128xf32>
    %338 = arith.subf %337, %330 : vector<8x128xf32>
    %339 = arith.mulf %338, %336 : vector<8x128xf32>
    %340 = arith.mulf %330, %304 : vector<8x128xf32>
    %341 = arith.addf %339, %340 : vector<8x128xf32>
    %342 = arith.truncf %341 : vector<8x128xf32> to vector<8x128xbf16>
    %343 = arith.index_cast %c8_i32 : i32 to index
    %c0_84 = arith.constant 0 : index
    %c0_85 = arith.constant 0 : index
    %344 = vector.load %arg6[%343, %c0_84, %c0_85] : memref<10x8x128xbf16, #tpu.memory_space<vmem>>, vector<1x8x128xbf16>
    %345 = vector.shape_cast %344 : vector<1x8x128xbf16> to vector<8x128xbf16>
    %346 = vector.shape_cast %342 : vector<8x128xbf16> to vector<1x8x128xbf16>
    tpu.vector_store %arg6[%343, %c0_84, %c0_85], %346 {strides = array<i32>} : memref<10x8x128xbf16, #tpu.memory_space<vmem>>, vector<1x8x128xbf16>,
    %c9_i32 = arith.constant 9 : i32
    %347 = arith.truncf %341 : vector<8x128xf32> to vector<8x128xbf16>
    %cst_86 = arith.constant dense<0.000000e+00> : vector<8x384xf32>
    %348 = tpu.matmul %347, %12, %cst_86 {dimension_numbers = #tpu.dot_dimension_numbers<[1], [0], [0], [1], [0, 0, 1, 1], [], []>} : vector<8x128xbf16>, vector<128x384xbf16>, vector<8x384xf32> -> vector<8x384xf32>
    %349 = arith.index_cast %c9_i32 : i32 to index
    %c0_87 = arith.constant 0 : index
    %c0_88 = arith.constant 0 : index
    %350 = vector.load %arg7[%349, %c0_87, %c0_88] : memref<10x8x384xf32, #tpu.memory_space<vmem>>, vector<1x8x384xf32>
    %351 = vector.shape_cast %350 : vector<1x8x384xf32> to vector<8x384xf32>
    %352 = vector.extract_strided_slice %351 {offsets = [0, 0], sizes = [8, 128], strides = [1, 1]} : vector<8x384xf32> to vector<8x128xf32>
    %353 = vector.extract_strided_slice %348 {offsets = [0, 0], sizes = [8, 128], strides = [1, 1]} : vector<8x384xf32> to vector<8x128xf32>
    %354 = arith.addf %352, %353 : vector<8x128xf32>
    %355 = arith.negf %354 : vector<8x128xf32>
    %356 = math.exp %355 : vector<8x128xf32>
    %cst_89 = arith.constant 1.000000e+00 : f32
    %357 = vector.broadcast %cst_89 : f32 to vector<8x128xf32>
    %358 = arith.addf %357, %356 : vector<8x128xf32>
    %359 = arith.divf %357, %358 : vector<8x128xf32>
    %360 = vector.extract_strided_slice %351 {offsets = [0, 128], sizes = [8, 128], strides = [1, 1]} : vector<8x384xf32> to vector<8x128xf32>
    %361 = vector.extract_strided_slice %348 {offsets = [0, 128], sizes = [8, 128], strides = [1, 1]} : vector<8x384xf32> to vector<8x128xf32>
    %362 = arith.addf %360, %361 : vector<8x128xf32>
    %363 = arith.negf %362 : vector<8x128xf32>
    %364 = math.exp %363 : vector<8x128xf32>
    %cst_90 = arith.constant 1.000000e+00 : f32
    %365 = vector.broadcast %cst_90 : f32 to vector<8x128xf32>
    %366 = arith.addf %365, %364 : vector<8x128xf32>
    %367 = arith.divf %365, %366 : vector<8x128xf32>
    %368 = vector.extract_strided_slice %351 {offsets = [0, 256], sizes = [8, 128], strides = [1, 1]} : vector<8x384xf32> to vector<8x128xf32>
    %369 = vector.extract_strided_slice %348 {offsets = [0, 256], sizes = [8, 128], strides = [1, 1]} : vector<8x384xf32> to vector<8x128xf32>
    %370 = arith.addf %369, %11 : vector<8x128xf32>
    %371 = arith.mulf %359, %370 : vector<8x128xf32>
    %372 = arith.addf %368, %371 : vector<8x128xf32>
    %373 = math.tanh %372 : vector<8x128xf32>
    %cst_91 = arith.constant 1.000000e+00 : f32
    %374 = vector.broadcast %cst_91 : f32 to vector<8x128xf32>
    %375 = arith.subf %374, %367 : vector<8x128xf32>
    %376 = arith.mulf %375, %373 : vector<8x128xf32>
    %377 = arith.mulf %367, %341 : vector<8x128xf32>
    %378 = arith.addf %376, %377 : vector<8x128xf32>
    %379 = arith.truncf %378 : vector<8x128xf32> to vector<8x128xbf16>
    %380 = arith.index_cast %c9_i32 : i32 to index
    %c0_92 = arith.constant 0 : index
    %c0_93 = arith.constant 0 : index
    %381 = vector.load %arg6[%380, %c0_92, %c0_93] : memref<10x8x128xbf16, #tpu.memory_space<vmem>>, vector<1x8x128xbf16>
    %382 = vector.shape_cast %381 : vector<1x8x128xbf16> to vector<8x128xbf16>
    %383 = vector.shape_cast %379 : vector<8x128xbf16> to vector<1x8x128xbf16>
    tpu.vector_store %arg6[%380, %c0_92, %c0_93], %383 {strides = array<i32>} : memref<10x8x128xbf16, #tpu.memory_space<vmem>>, vector<1x8x128xbf16>,
    %c10_i32 = arith.constant 10 : i32
    return
  }
  func.func @transform_0(%arg0: i32) -> (i32, i32, i32) {
    %c0_i32 = arith.constant 0 : i32
    %c0_i32_0 = arith.constant 0 : i32
    %c0_i32_1 = arith.constant 0 : i32
    return %c0_i32, %arg0, %c0_i32_0 : i32, i32, i32
  }
  func.func @transform_1(%arg0: i32) -> (i32, i32) {
    %c0_i32 = arith.constant 0 : i32
    %c0_i32_0 = arith.constant 0 : i32
    %c0_i32_1 = arith.constant 0 : i32
    return %c0_i32, %c0_i32_0 : i32, i32
  }
  func.func @transform_2(%arg0: i32) -> (i32, i32) {
    %c0_i32 = arith.constant 0 : i32
    %c0_i32_0 = arith.constant 0 : i32
    %c0_i32_1 = arith.constant 0 : i32
    return %c0_i32, %c0_i32_0 : i32, i32
  }
  func.func @transform_3(%arg0: i32) -> (i32, i32) {
    %c0_i32 = arith.constant 0 : i32
    %c0_i32_0 = arith.constant 0 : i32
    %c0_i32_1 = arith.constant 0 : i32
    return %c0_i32, %c0_i32_0 : i32, i32
  }
  func.func @transform_4(%arg0: i32) -> (i32, i32) {
    %c0_i32 = arith.constant 0 : i32
    %c0_i32_0 = arith.constant 0 : i32
    %c0_i32_1 = arith.constant 0 : i32
    return %c0_i32, %c0_i32_0 : i32, i32
  }
  func.func @transform_5(%arg0: i32) -> (i32, i32, i32) {
    %c0_i32 = arith.constant 0 : i32
    %c0_i32_0 = arith.constant 0 : i32
    %c0_i32_1 = arith.constant 0 : i32
    return %c0_i32, %arg0, %c0_i32_0 : i32, i32, i32
  }
}

</mosaic_0001>

<bundles_post_ra>
// kernel: tpu_custom_call.1
= control target key start
LH: loop header
LB: loop body
LE: loop exit
PB: predicated region body
PF: predicated region fallthrough
CT: control target
= control target key end

     0   :  { %10 = vsyncpa [#allocation4], 0  ;;  %s2505_s0 = inlined_call_operand.hbm [shape: bf16[10,8,64], index: 0, kind: input, shape index: {}]   ;;  %s2506_s1 = inlined_call_operand.hbm [shape: bf16[64,384], index: 1, kind: input, shape index: {}]   ;;  %s2507_s2 = inlined_call_operand.hbm [shape: f32[1,384], index: 2, kind: input, shape index: {}]   ;;  %s2508_s3 = inlined_call_operand.hbm [shape: bf16[128,384], index: 3, kind: input, shape index: {}]   ;;  %s2509_s4 = inlined_call_operand.vmem [shape: f32[1,128], index: 4, kind: input, shape index: {}]   ;;  %s2510_s5 = inlined_call_operand.hbm [shape: bf16[10,8,128], index: 5, kind: output, shape index: {}]  }
   0x1   :  { %11 = vsyncpa [#allocation7], 0 }
   0x2   :  { %12 = vsyncpa [#allocation10], 0  ;;  %s31_s20 = sshll.u32 %s2506_s1, 4  ;;  %s32_s20 = int_to_ptr.hbm [resolvable:$true] %s31_s20 }
   0x3   :  { %13 = vsyncpa [#allocation5], 0  ;;  %s1957_s21 = smov [#allocation6]   ;;  %s18_s25 = sshll.u32 %s2505_s0, 4  ;;  %s19_s25 = int_to_ptr.hbm [resolvable:$true] %s18_s25 }
   0x4   :  { %s33_s22 = sshll.u32 %s1957_s21, 4  ;;  %s1958_s26 = smov 192   ;;  %s34_s22 = int_to_ptr.vmem [resolvable:$true] %s33_s22 }
   0x5   :  { %s1959_s27 = smov 12   ;;  %s1960_s28 = smov [#allocation3]  }
   0x6   :  { %39 = dma.hbm_to_vmem [thread:$0]  %s32_s20, 1536, %s34_s22, [#allocation7], %s1958_s26, %s1958_s26, %s1959_s27  }
   0x7   :  { %s20_s29 = sshll.u32 %s1960_s28, 4  ;;  %s1961_s30 = smov 64   ;;  %s21_s29 = int_to_ptr.vmem [resolvable:$true] %s20_s29 }
   0x8   :  { %s1962_s6 = smov 4   ;;  %s45_s8 = sshll.u32 %s2507_s2, 4  ;;  %s46_s8 = int_to_ptr.hbm [resolvable:$true] %s45_s8 }
   0x9   :  { %26 = dma.hbm_to_vmem [thread:$0]  %s19_s25, 640, %s21_s29, [#allocation4], %s1961_s30, %s1961_s30, %s1962_s6  }
   0xa   :  { %s1963_s9 = smov [#allocation8]   ;;  %s55_s12 = sshll.u32 %s2508_s3, 4  ;;  %s56_s12 = int_to_ptr.hbm [resolvable:$true] %s55_s12 }
   0xb   :  { %s47_s0 = sshll.u32 %s1963_s9, 4  ;;  %s1964_s13 = smov [#allocation9]   ;;  %s48_s0 = int_to_ptr.vmem [resolvable:$true] %s47_s0 }
   0xc   :  { %50 = dma.hbm_to_vmem [thread:$0]  %s46_s8, 48, %s48_s0, [#allocation7]  }
   0xd   :  { %s57_s14 = sshll.u32 %s1964_s13, 4  ;;  %s58_s14 = int_to_ptr.vmem [resolvable:$true] %s57_s14 }
   0xe   :  { %63 = dma.hbm_to_vmem [thread:$0]  %s56_s12, 3072, %s58_s14, [#allocation10], %s1958_s26, %s1958_s26, %s1959_s27  }
   0xf   :  { %1949 = dma.done.wait [#allocation4], 640  }
  0x10   :  { %1950 = vsyncadd [#allocation4], 4294966656 }
  0x11   :  { %1951 = dma.done.wait [#allocation7], 1584  }
  0x12   :  { %1952 = vsyncadd [#allocation7], 4294965712 }
  0x13   :  { %1953 = dma.done.wait [#allocation10], 3072  }
  0x14   :  { %1954 = vsyncadd [#allocation10], 4294964224  ;;  %v1535_v0 = vld [vmem:[#allocation6 + $0x48] sm:$0xf]  ;;  %v1691_v1 = vld [vmem:[#allocation6 + $0x50] sm:$0xf0] }
  0x15   :  { %v1646_v2 = vld [vmem:[#allocation9 + $0xa8] sm:$0xf]  ;;  %v1536_v3 = vor.u32 %v1691_v1, %v1535_v0  ;;  %v1715_v4 = vld [vmem:[#allocation9 + $0xb0] sm:$0xf0]  ;;  %v1523_v5 = vld [vmem:[#allocation6 + $0x30] sm:$0xf] }
  0x16   :  { %v1688_v6 = vld [vmem:[#allocation6 + $0x38] sm:$0xf0]  ;;  %v2012_v7 = vor.u32 %v1715_v4, %v1646_v2  ;;  %v1634_v8 = vld [vmem:[#allocation9 + $0x90] sm:$0xf]  ;;  %v1712_v9 = vld [vmem:[#allocation9 + $0x98] sm:$0xf0] }
  0x17   :  { %226 = vmatpush.bf16.msra.mxu0 %v1536_v3  ;;  %v1524_v10 = vor.u32 %v1688_v6, %v1523_v5  ;;  %v2015_v11 = vor.u32 %v1712_v9, %v1634_v8  ;;  %v1511_v12 = vld [vmem:[#allocation6 + $0x18] sm:$0xf]  ;;  %v1685_v13 = vld [vmem:[#allocation6 + $0x20] sm:$0xf0]  ;;  %v1622_v14 = vld [vmem:[#allocation9 + $0x78] sm:$0xf] }
  0x18   :  { %518 = vmatpush.bf16.msra.mxu3 %v2012_v7  ;;  %v1709_v15 = vld [vmem:[#allocation9 + $0x80] sm:$0xf0]  ;;  %v1512_v16 = vor.u32 %v1685_v13, %v1511_v12  ;;  %v1499_v18 = vld [vmem:[#allocation6] sm:$0xf]  ;;  %v1682_v19 = vld [vmem:[#allocation6 + $0x8] sm:$0xf0] }
  0x19   :  { %v2018_v17 = vor.u32 %v1709_v15, %v1622_v14  ;;  %v1610_v20 = vld [vmem:[#allocation9 + $0x60] sm:$0xf]  ;;  %v1706_v21 = vld [vmem:[#allocation9 + $0x68] sm:$0xf0]  ;;  %v1654_v22 = vld [vmem:[#allocation9 + $0xb0] sm:$0xf]  ;;  %v1500_v24 = vor.u32 %v1682_v19, %v1499_v18 }
  0x1a   :  { %v1716_v23 = vld [vmem:[#allocation9 + $0xb8] sm:$0xf0]  ;;  %v2021_v25 = vor.u32 %v1706_v21, %v1610_v20  ;;  %v1598_v27 = vld [vmem:[#allocation9 + $0x48] sm:$0xf]  ;;  %v1703_v28 = vld [vmem:[#allocation9 + $0x50] sm:$0xf0] }
  0x1b   :  { %227 = vmatpush.bf16.msra.mxu0 %v1524_v10  ;;  %v2023_v26 = vor.u32 %v1716_v23, %v1654_v22  ;;  %v1642_v29 = vld [vmem:[#allocation9 + $0x98] sm:$0xf]  ;;  %v1713_v30 = vld [vmem:[#allocation9 + $0xa0] sm:$0xf0]  ;;  %vm206_vm0 = vcmask 523264   ;;  %v2029_v32 = vor.u32 %v1703_v28, %v1598_v27  ;;  %v2055_v0 = vld [vmem:[#allocation3 + $0x8] sm:$0xff] }
  0x1c   :  { %519 = vmatpush.bf16.msra.mxu3 %v2015_v11  ;;  %v2025_v31 = vld [vmem:[#allocation3] sm:$0xff]  ;;  %v1586_v33 = vld [vmem:[#allocation9 + $0x30] sm:$0xf]  ;;  %v2031_v34 = vor.u32 %v1713_v30, %v1642_v29  ;;  %v1700_v35 = vld [vmem:[#allocation9 + $0x38] sm:$0xf0]  ;;  %v1965_v14 = vmov 0  }
  0x1d   :  { %v1630_v36 = vld [vmem:[#allocation9 + $0x80] sm:$0xf]  ;;  %v1710_v37 = vld [vmem:[#allocation9 + $0x88] sm:$0xf0]  ;;  %v1690_v38 = vld [vmem:[#allocation6 + $0x4c] sm:$0xf]  ;;  %v2036_v41 = vor.u32 %v1700_v35, %v1586_v33 }
  0x1e   :  { %v1537_v39 = vld [vmem:[#allocation6 + $0x54] sm:$0xf0]  ;;  %v1574_v42 = vld [vmem:[#allocation9 + $0x18] sm:$0xf]  ;;  %v1697_v43 = vld [vmem:[#allocation9 + $0x20] sm:$0xf0]  ;;  %v2039_v44 = vor.u32 %v1710_v37, %v1630_v36 }
  0x1f   :  { %228 = vmatpush.bf16.msra.mxu0 %v1512_v16  ;;  %v1540_v40 = vor.u32 %v1690_v38, %v1537_v39  ;;  %v1618_v45 = vld [vmem:[#allocation9 + $0x68] sm:$0xf]  ;;  %v1707_v46 = vld [vmem:[#allocation9 + $0x70] sm:$0xf0]  ;;  %v1687_v47 = vld [vmem:[#allocation6 + $0x34] sm:$0xf]  ;;  %v2042_v50 = vor.u32 %v1697_v43, %v1574_v42 }
  0x20   :  { %520 = vmatpush.bf16.msra.mxu3 %v2018_v17  ;;  %v1525_v48 = vld [vmem:[#allocation6 + $0x3c] sm:$0xf0]  ;;  %v1562_v51 = vld [vmem:[#allocation9] sm:$0xf]  ;;  %v1694_v52 = vld [vmem:[#allocation9 + $0x8] sm:$0xf0]  ;;  %v2045_v53 = vor.u32 %v1707_v46, %v1618_v45 }
  0x21   :  { %260 = vmatpush.bf16.msra.mxu1 %v1540_v40  ;;  %v1528_v49 = vor.u32 %v1687_v47, %v1525_v48  ;;  %v1606_v54 = vld [vmem:[#allocation9 + $0x50] sm:$0xf]  ;;  %v1704_v55 = vld [vmem:[#allocation9 + $0x58] sm:$0xf0]  ;;  %v1684_v56 = vld [vmem:[#allocation6 + $0x1c] sm:$0xf]  ;;  %v2048_v61 = vor.u32 %v1694_v52, %v1562_v51 }
  0x22   :  { %v1714_v57 = vld [vmem:[#allocation9 + $0xac] sm:$0xf]  ;;  %v1648_v58 = vld [vmem:[#allocation9 + $0xb4] sm:$0xf0]  ;;  %v1513_v59 = vld [vmem:[#allocation6 + $0x24] sm:$0xf0]  ;;  %v2051_v62 = vor.u32 %v1704_v55, %v1606_v54 }
  0x23   :  { %229 = vmatpush.bf16.msra.mxu0 %v1500_v24  ;;  %v1516_v60 = vor.u32 %v1684_v56, %v1513_v59  ;;  %v2053_v63 = vor.u32 %v1714_v57, %v1648_v58  ;;  %v1711_v1 = vld [vmem:[#allocation9 + $0x94] sm:$0xf]  ;;  %v1636_v2 = vld [vmem:[#allocation9 + $0x9c] sm:$0xf0]  ;;  %v1501_v4 = vld [vmem:[#allocation6 + $0xc] sm:$0xf0] }
  0x24   :  { %521 = vmatpush.bf16.msra.mxu3 %v2021_v25  ;;  %v1681_v3 = vld [vmem:[#allocation6 + $0x4] sm:$0xf]  ;;  %v2060_v6 = vor.u32 %v1711_v1, %v1636_v2  ;;  %v1708_v8 = vld [vmem:[#allocation9 + $0x7c] sm:$0xf]  ;;  %v1624_v9 = vld [vmem:[#allocation9 + $0x84] sm:$0xf0] }
  0x25   :  { %261 = vmatpush.bf16.msra.mxu1 %v1528_v49  ;;  %v1504_v5 = vor.u32 %v1681_v3, %v1501_v4  ;;  %v1594_v10 = vld [vmem:[#allocation9 + $0x38] sm:$0xf]  ;;  %v1701_v12 = vld [vmem:[#allocation9 + $0x40] sm:$0xf0]  ;;  %v1543_v13 = vld [vmem:[#allocation6 + $0x50] sm:$0xf]  ;;  %v2071_v23 = vor.u32 %v1708_v8, %v1624_v9 }
  0x26   :  { %1545 = vmatmul.msk.bf16.vlgmr.msra.gmra.mxu0 %vm206_vm0, %v2025_v31  ;;  %v2066_v15 = vor.u32 %v1701_v12, %v1594_v10  ;;  %v1692_v16 = vld [vmem:[#allocation6 + $0x58] sm:$0xf0]  ;;  %v1531_v18 = vld [vmem:[#allocation6 + $0x38] sm:$0xf]  ;;  %v1689_v19 = vld [vmem:[#allocation6 + $0x40] sm:$0xf0] }
  0x27   :  { %544 = vmatpush.bf16.msrb.mxu0 %v2023_v26  ;;  %v1544_v20 = vor.u32 %v1692_v16, %v1543_v13  ;;  %v1582_v21 = vld [vmem:[#allocation9 + $0x20] sm:$0xf]  ;;  %v1698_v22 = vld [vmem:[#allocation9 + $0x28] sm:$0xf0]  ;;  %v1705_v27 = vld [vmem:[#allocation9 + $0x64] sm:$0xf]  ;;  %v1532_v29 = vor.u32 %v1689_v19, %v1531_v18 }
  0x28   :  { %522 = vmatpush.bf16.msra.mxu3 %v2029_v32  ;;  %v2074_v24 = vor.u32 %v1698_v22, %v1582_v21  ;;  %v1612_v28 = vld [vmem:[#allocation9 + $0x6c] sm:$0xf0]  ;;  %v1519_v30 = vld [vmem:[#allocation6 + $0x20] sm:$0xf]  ;;  %v1686_v33 = vld [vmem:[#allocation6 + $0x28] sm:$0xf0] }
  0x29   :  { %262 = vmatpush.bf16.msra.mxu1 %v1516_v60  ;;  %294 = vmatpush.bf16.msra.mxu2 %v1544_v20  ;;  %v2078_v35 = vor.u32 %v1705_v27, %v1612_v28  ;;  %v1702_v36 = vld [vmem:[#allocation9 + $0x4c] sm:$0xf]  ;;  %v1600_v37 = vld [vmem:[#allocation9 + $0x54] sm:$0xf0]  ;;  %v1520_v38 = vor.u32 %v1686_v33, %v1519_v30  ;;  %v2085_v40 = vld [vmem:[#allocation3 + $0x10] sm:$0xff]  ;;  %s1462_s20 = sshll.u32 %s2510_s5, 4  ;;  %s1463_s20 = int_to_ptr.hbm [resolvable:$true] %s1462_s20 }
  0x2a   :  { %v2083_v39 = vor.u32 %v1702_v36, %v1600_v37  ;;  %v1699_v42 = vld [vmem:[#allocation9 + $0x34] sm:$0xf]  ;;  %v1588_v43 = vld [vmem:[#allocation9 + $0x3c] sm:$0xf0]  ;;  %v1696_v46 = vld [vmem:[#allocation9 + $0x1c] sm:$0xf] }
  0x2b   :  { %545 = vmatpush.bf16.msrb.mxu0 %v2031_v34  ;;  %v2089_v45 = vor.u32 %v1699_v42, %v1588_v43  ;;  %v1507_v47 = vld [vmem:[#allocation6 + $0x8] sm:$0xf]  ;;  %v1683_v48 = vld [vmem:[#allocation6 + $0x10] sm:$0xf0]  ;;  %v1576_v49 = vld [vmem:[#allocation9 + $0x24] sm:$0xf0] }
  0x2c   :  { %523 = vmatpush.bf16.msra.mxu3 %v2036_v41  ;;  %v1508_v51 = vor.u32 %v1683_v48, %v1507_v47  ;;  %v1570_v52 = vld [vmem:[#allocation9 + $0x8] sm:$0xf]  ;;  %v1695_v54 = vld [vmem:[#allocation9 + $0x10] sm:$0xf0]  ;;  %v2099_v56 = vor.u32 %v1696_v46, %v1576_v49  ;;  %v1693_v57 = vld [vmem:[#allocation9 + $0x4] sm:$0xf] }
  0x2d   :  { %263 = vmatpush.bf16.msra.mxu1 %v1504_v5  ;;  %295 = vmatpush.bf16.msra.mxu2 %v1532_v29  ;;  %v2094_v55 = vor.u32 %v1695_v54, %v1570_v52  ;;  %v1564_v58 = vld [vmem:[#allocation9 + $0xc] sm:$0xf0]  ;;  %v109_v4 = vld [vmem:[#allocation8] sm:$0x7] }
  0x2e   :  { %v2108_v59 = vor.u32 %v1693_v57, %v1564_v58  ;;  %v1679_v60 = vld [vmem:[#allocation3 + $0x18] sm:$0xff]  ;;  %v2187_v8 = vperm.slane %v109_v4, 0  ;;  %v2194_v18 = vperm.slane %v109_v4, 1  ;;  %v2205_v58 = vperm.slane %v109_v4, 2 }
  0x2f   :  { %546 = vmatpush.bf16.msrb.mxu0 %v2039_v44 }
  0x30   :  { %524 = vmatpush.bf16.msra.mxu3 %v2042_v50  ;;  %1550 = vmatmul.msk.bf16.vlgmr.msra.gmra.mxu1 %vm206_vm0, %v2025_v31 }
  0x31   :  { %610 = vmatpush.bf16.msrb.mxu1 %v2012_v7  ;;  %296 = vmatpush.bf16.msra.mxu2 %v1520_v38 }
  0x33   :  { %547 = vmatpush.bf16.msrb.mxu0 %v2045_v53 }
  0x34   :  { %525 = vmatpush.bf16.msra.mxu3 %v2048_v61 }
  0x35   :  { %611 = vmatpush.bf16.msrb.mxu1 %v2015_v11  ;;  %297 = vmatpush.bf16.msra.mxu2 %v1508_v51 }
  0x36   :  { %1546 = vmatmul.msk.bf16.gmra.mxu0 %vm206_vm0, %v2055_v0 }
  0x37   :  { %548 = vmatpush.bf16.msrb.mxu0 %v2051_v62  ;;  %526 = vmatmul.bf16.vlgmr.msra.gmra.mxu3 %v1965_v14 }
  0x38   :  { %531 = vmatpush.bf16.msrb.mxu3 %v2053_v63  ;;  %1555 = vmatmul.msk.bf16.vlgmr.msra.gmra.mxu2 %vm206_vm0, %v2025_v31  ;;  %v1680_v31 = vld [vmem:[#allocation3 + $0x20] sm:$0xff] }
  0x39   :  { %612 = vmatpush.bf16.msrb.mxu1 %v2018_v17  ;;  %623 = vmatpush.bf16.msrb.mxu2 %v2053_v63 }
  0x3b   :  { %549 = vmatpush.bf16.msrb.mxu0 %v2066_v15 }
  0x3c   :  { %532 = vmatpush.bf16.msrb.mxu3 %v2060_v6 }
  0x3d   :  { %613 = vmatpush.bf16.msrb.mxu1 %v2021_v25  ;;  %624 = vmatpush.bf16.msrb.mxu2 %v2060_v6 }
  0x3f   :  { %550 = vmatpush.bf16.msrb.mxu0 %v2074_v24 }
  0x40   :  { %533 = vmatpush.bf16.msrb.mxu3 %v2071_v23  ;;  %1551 = vmatmul.msk.bf16.gmra.mxu1 %vm206_vm0, %v2055_v0 }
  0x41   :  { %614 = vmatpush.bf16.msrb.mxu1 %v2029_v32  ;;  %625 = vmatpush.bf16.msrb.mxu2 %v2071_v23 }
  0x43   :  { %551 = vmatpush.bf16.msrb.mxu0 %v2094_v55 }
  0x44   :  { %534 = vmatpush.bf16.msrb.mxu3 %v2078_v35 }
  0x45   :  { %615 = vmatpush.bf16.msrb.mxu1 %v2036_v41  ;;  %626 = vmatpush.bf16.msrb.mxu2 %v2078_v35 }
  0x46   :  { %1547 = vmatmul.msk.bf16.gmra.mxu0 %vm206_vm0, %v2085_v40 }
  0x47   :  { %704 = vmatpush.bf16.msra.mxu0 %v2012_v7 }
  0x48   :  { %535 = vmatpush.bf16.msrb.mxu3 %v2083_v39  ;;  %1556 = vmatmul.msk.bf16.gmra.mxu2 %vm206_vm0, %v2055_v0 }
  0x49   :  { %616 = vmatpush.bf16.msrb.mxu1 %v2042_v50  ;;  %627 = vmatpush.bf16.msrb.mxu2 %v2083_v39 }
  0x4b   :  { %705 = vmatpush.bf16.msra.mxu0 %v2015_v11 }
  0x4c   :  { %536 = vmatpush.bf16.msrb.mxu3 %v2089_v45 }
  0x4d   :  { %617 = vmatpush.bf16.msrb.mxu1 %v2048_v61  ;;  %628 = vmatpush.bf16.msrb.mxu2 %v2089_v45 }
  0x4f   :  { %706 = vmatpush.bf16.msra.mxu0 %v2018_v17 }
  0x50   :  { %537 = vmatpush.bf16.msrb.mxu3 %v2099_v56  ;;  %1552 = vmatmul.msk.bf16.gmra.mxu1 %vm206_vm0, %v2085_v40 }
  0x51   :  { %717 = vmatpush.bf16.msra.mxu1 %v2053_v63  ;;  %629 = vmatpush.bf16.msrb.mxu2 %v2099_v56 }
  0x53   :  { %707 = vmatpush.bf16.msra.mxu0 %v2021_v25 }
  0x54   :  { %538 = vmatpush.bf16.msrb.mxu3 %v2108_v59 }
  0x55   :  { %718 = vmatpush.bf16.msra.mxu1 %v2060_v6  ;;  %630 = vmatpush.bf16.msrb.mxu2 %v2108_v59 }
  0x56   :  { %1548 = vmatmul.msk.bf16.gmra.mxu0 %vm206_vm0, %v1679_v60 }
  0x57   :  { %539 = vmatmul.bf16.vlgmr.msrb.gmra.mxu3 %v1965_v14  ;;  %708 = vmatpush.bf16.msra.mxu0 %v2029_v32 }
  0x58   :  { %636 = vmatpush.bf16.msra.mxu3 %v2023_v26  ;;  %1557 = vmatmul.msk.bf16.gmra.mxu2 %vm206_vm0, %v2085_v40 }
  0x59   :  { %719 = vmatpush.bf16.msra.mxu1 %v2071_v23  ;;  %730 = vmatpush.bf16.msra.mxu2 %v2023_v26 }
  0x5b   :  { %709 = vmatpush.bf16.msra.mxu0 %v2036_v41 }
  0x5c   :  { %637 = vmatpush.bf16.msra.mxu3 %v2031_v34 }
  0x5d   :  { %720 = vmatpush.bf16.msra.mxu1 %v2078_v35  ;;  %731 = vmatpush.bf16.msra.mxu2 %v2031_v34 }
  0x5f   :  { %710 = vmatpush.bf16.msra.mxu0 %v2042_v50 }
  0x60   :  { %638 = vmatpush.bf16.msra.mxu3 %v2039_v44  ;;  %1553 = vmatmul.msk.bf16.gmra.mxu1 %vm206_vm0, %v1679_v60 }
  0x61   :  { %721 = vmatpush.bf16.msra.mxu1 %v2083_v39  ;;  %732 = vmatpush.bf16.msra.mxu2 %v2039_v44 }
  0x63   :  { %711 = vmatpush.bf16.msra.mxu0 %v2048_v61 }
  0x64   :  { %639 = vmatpush.bf16.msra.mxu3 %v2045_v53 }
  0x65   :  { %722 = vmatpush.bf16.msra.mxu1 %v2089_v45  ;;  %733 = vmatpush.bf16.msra.mxu2 %v2045_v53 }
  0x66   :  { %1549 = vmatmul.msk.bf16.gmra.mxu0 %vm206_vm0, %v1680_v31 }
  0x68   :  { %640 = vmatpush.bf16.msra.mxu3 %v2051_v62  ;;  %1558 = vmatmul.msk.bf16.gmra.mxu2 %vm206_vm0, %v1679_v60  ;;  %v2210_v60 = vld [vmem:[%s2509_s4] ss:$0 sm:$0xff] }
  0x69   :  { %723 = vmatpush.bf16.msra.mxu1 %v2099_v56  ;;  %734 = vmatpush.bf16.msra.mxu2 %v2051_v62 }
  0x6c   :  { %641 = vmatpush.bf16.msra.mxu3 %v2066_v15 }
  0x6d   :  { %724 = vmatpush.bf16.msra.mxu1 %v2108_v59  ;;  %735 = vmatpush.bf16.msra.mxu2 %v2066_v15 }
  0x70   :  { %642 = vmatpush.bf16.msra.mxu3 %v2074_v24  ;;  %1554 = vmatmul.msk.bf16.gmra.mxu1 %vm206_vm0, %v1680_v31 }
  0x71   :  { %736 = vmatpush.bf16.msra.mxu2 %v2074_v24 }
  0x74   :  { %643 = vmatpush.bf16.msra.mxu3 %v2094_v55 }
  0x75   :  { %737 = vmatpush.bf16.msra.mxu2 %v2094_v55 }
  0x76   :  { %552 = vmatmul.bf16.vlgmr.msrb.gmra.mxu0 %v1965_v14 }
  0x77   :  { %811 = vmatpush.bf16.msrb.mxu0 %v2053_v63 }
  0x78   :  { %798 = vmatpush.bf16.msrb.mxu3 %v2012_v7  ;;  %1559 = vmatmul.msk.bf16.gmra.mxu2 %vm206_vm0, %v1680_v31 }
  0x7b   :  { %812 = vmatpush.bf16.msrb.mxu0 %v2060_v6 }
  0x7c   :  { %799 = vmatpush.bf16.msrb.mxu3 %v2015_v11 }
  0x7f   :  { %813 = vmatpush.bf16.msrb.mxu0 %v2071_v23 }
  0x80   :  { %800 = vmatpush.bf16.msrb.mxu3 %v2018_v17 }
  0x83   :  { %814 = vmatpush.bf16.msrb.mxu0 %v2078_v35 }
  0x84   :  { %801 = vmatpush.bf16.msrb.mxu3 %v2021_v25 }
  0x87   :  { %815 = vmatpush.bf16.msrb.mxu0 %v2083_v39 }
  0x88   :  { %802 = vmatpush.bf16.msrb.mxu3 %v2029_v32 }
  0x8b   :  { %816 = vmatpush.bf16.msrb.mxu0 %v2089_v45 }
  0x8c   :  { %803 = vmatpush.bf16.msrb.mxu3 %v2036_v41 }
  0x8f   :  { %817 = vmatpush.bf16.msrb.mxu0 %v2099_v56 }
  0x90   :  { %804 = vmatpush.bf16.msrb.mxu3 %v2042_v50 }
  0x93   :  { %818 = vmatpush.bf16.msrb.mxu0 %v2108_v59 }
  0x94   :  { %805 = vmatpush.bf16.msrb.mxu3 %v2048_v61 }
  0xa3   :  { %v231_v0 = vpop.f32.mrf.mxu0 }
  0xa4   :  { %v232_v9 = vadd.f32 %v231_v0, %v2187_v8 }
  0xab   :  { %v2181_v1 = vpop.f32.mrf.mxu0 }
  0xad   :  { %v265_v19 = vpop.f32.mrf.mxu1 }
  0xae   :  { %v266_v22 = vadd.f32 %v265_v19, %v2194_v18 }
  0xb3   :  { %v2183_v2 = vpop.f32.mrf.mxu0 }
  0xba   :  { %v527_v3 = vpop.f32.mrf.mxu3 }
  0xbb   :  { %v2185_v5 = vpop.f32.mrf.mxu0  ;;  %v560_v13 = vadd.f32 %v527_v3, %v232_v9  ;;  %v299_v9 = vpop.f32.mrf.mxu2 }
  0xbd   :  { %v1656_v14 = vmul.f32 -1.442695, %v560_v13 }
  0xbf   :  { %1728 = vpow2.f32 %v1656_v14  ;;  %v300_v14 = vadd.f32 %v299_v9, %v2205_v58 }
  0xc2   :  { %v529_v10 = vpop.f32.mrf.mxu3 }
  0xc3   :  { %v2190_v12 = vpop.f32.mrf.mxu0 }
  0xc5   :  { %v1729_v20 = vpop.eup %1728 }
  0xc6   :  { %v564_v27 = vadd.f32 1.0, %v1729_v20 }
  0xc8   :  { %1730 = vrcp.f32 %v564_v27  ;;  %v576_v57 = vand.u32 2147483648, %v564_v27  ;;  %vm570_vm2 = vweird.f32 %v564_v27  ;;  %v574_v31 = vand.u32 2147483647, %v564_v27 }
  0xca   :  { %v577_v13 = vor.u32 1.1754944e-38, %v576_v57  ;;  %vm575_vm4 = vcmp.eq.f32.partialorder %v574_v31, 8.507059e+37 }
  0xcb   :  { %v2192_v16 = vpop.f32.mrf.mxu0 }
  0xce   :  { %v1731_v36 = vpop.eup %1730 }
  0xcf   :  { %v566_v40 = vmul.f32 %v1731_v36, %v564_v27  ;;  %vm571_vm1 = vweird.f32 %v1731_v36 }
  0xd0   :  { %vm572_vm3 = vmor %vm570_vm2, %vm571_vm1 }
  0xd1   :  { %v567_v46 = vsub.f32 1.0, %v566_v40 }
  0xd3   :  { %v2196_v21 = vpop.f32.mrf.mxu0  ;;  %v568_v47 = vmul.f32 %v1731_v36, %v567_v46 }
  0xd4   :  { %2511 = vst [vmem:[#allocation16_spill] sm:$0xff] %v2196_v21 }
  0xd5   :  { %v569_v54 = vadd.f32 %v1731_v36, %v568_v47 }
  0xd7   :  { %v573_v3 = vsel %vm572_vm3, %v1731_v36, %v569_v54 }
  0xd8   :  { %v578_v4 = vsel %vm575_vm4, %v577_v13, %v573_v3 }
  0xda   :  { %v540_v28 = vpop.f32.mrf.mxu3 }
  0xdb   :  { %v580_v29 = vadd.f32 %v540_v28, %v266_v22  ;;  %v2199_v33 = vpop.f32.mrf.mxu0 }
  0xdc   :  { %2512 = vst [vmem:[#allocation17_spill] sm:$0xff] %v2199_v33 }
  0xdd   :  { %v1657_v30 = vmul.f32 -1.442695, %v580_v29 }
  0xdf   :  { %1732 = vpow2.f32 %v1657_v30 }
  0xe2   :  { %v542_v37 = vpop.f32.mrf.mxu3 }
  0xe3   :  { %v2201_v43 = vpop.f32.mrf.mxu0 }
  0xe4   :  { %2513 = vst [vmem:[#allocation18_spill] sm:$0xff] %v2201_v43 }
  0xe5   :  { %v1733_v38 = vpop.eup %1732 }
  0xe6   :  { %v584_v42 = vadd.f32 1.0, %v1733_v38 }
  0xe8   :  { %1734 = vrcp.f32 %v584_v42  ;;  %vm590_vm5 = vweird.f32 %v584_v42  ;;  %v596_v22 = vand.u32 2147483648, %v584_v42  ;;  %v594_v29 = vand.u32 2147483647, %v584_v42 }
  0xea   :  { %v597_v37 = vor.u32 1.1754944e-38, %v596_v22  ;;  %vm595_vm8 = vcmp.eq.f32.partialorder %v594_v29, 8.507059e+37 }
  0xeb   :  { %v2203_v49 = vpop.f32.mrf.mxu0 }
  0xec   :  { %2514 = vst [vmem:[#allocation19_spill] sm:$0xff] %v2203_v49 }
  0xee   :  { %v1735_v48 = vpop.eup %1734 }
  0xef   :  { %v586_v51 = vmul.f32 %v1735_v48, %v584_v42  ;;  %vm591_vm6 = vweird.f32 %v1735_v48  ;;  %v267_v42 = vpop.f32.mrf.mxu1 }
  0xf0   :  { %vm592_vm7 = vmor %vm590_vm5, %vm591_vm6 }
  0xf1   :  { %v587_v52 = vsub.f32 1.0, %v586_v51 }
  0xf3   :  { %v588_v0 = vmul.f32 %v1735_v48, %v587_v52  ;;  %v553_v10 = vpop.f32.mrf.mxu0 }
  0xf4   :  { %v600_v19 = vadd.f32 %v2210_v60, %v553_v10 }
  0xf5   :  { %v589_v20 = vadd.f32 %v1735_v48, %v588_v0 }
  0xf6   :  { %v601_v28 = vmul.f32 %v600_v19, %v578_v4 }
  0xf7   :  { %v593_v30 = vsel %vm592_vm7, %v1735_v48, %v589_v20  ;;  %v301_v48 = vpop.f32.mrf.mxu2  ;;  %v2242_v57 = vpop.f32.mrf.mxu1 }
  0xf8   :  { %v602_v27 = vadd.f32 %v601_v28, %v300_v14  ;;  %v598_v38 = vsel %vm595_vm8, %v597_v37, %v593_v30  ;;  %v234_v37 = vadd.f32 %v2181_v1, %v2187_v8 }
  0xf9   :  { %v604_v40 = vsub.f32 1.0, %v598_v38  ;;  %v606_v51 = vmul.f32 0.0, %v598_v38 }
  0xfa   :  { %1736 = vtanh.f32 %v602_v27 }
  0xfb   :  { %v555_v36 = vpop.f32.mrf.mxu0 }
  0xff   :  { %v2244_v31 = vpop.f32.mrf.mxu2  ;;  %v2246_v0 = vpop.f32.mrf.mxu1 }
 0x100   :  { %v1737_v46 = vpop.eup %1736 }
 0x101   :  { %v605_v47 = vmul.f32 %v1737_v46, %v604_v40  ;;  %v268_v46 = vadd.f32 %v267_v42, %v2194_v18 }
 0x103   :  { %v2214_v52 = vadd.f32 %v606_v51, %v605_v47 }
 0x105   :  { %v608_v54 = vpack.c.bf16 %v2214_v52, %v2214_v52 }
 0x107   :  { %609 = vst [vmem:[#allocation11] sm:$0xf] %v608_v54  ;;  %618 = vmatmul.bf16.vlgmr.msrb.gmra.mxu1 %v608_v54  ;;  %631 = vmatmul.bf16.vlgmr.msrb.gmra.mxu2 %v608_v54  ;;  %v2248_v3 = vpop.f32.mrf.mxu2  ;;  %v2250_v9 = vpop.f32.mrf.mxu1 }
 0x108   :  { %644 = vmatmul.bf16.vlgmr.msra.gmra.mxu3 %v608_v54  ;;  %824 = vmatpush.bf16.msrb.mxu1 %v2023_v26 }
 0x109   :  { %892 = vmatpush.bf16.msrb.mxu2 %v2012_v7  ;;  %905 = vmatpush.bf16.msra.mxu3 %v2053_v63 }
 0x10c   :  { %825 = vmatpush.bf16.msrb.mxu1 %v2031_v34 }
 0x10d   :  { %893 = vmatpush.bf16.msrb.mxu2 %v2015_v11  ;;  %906 = vmatpush.bf16.msra.mxu3 %v2060_v6 }
 0x10f   :  { %v2252_v10 = vpop.f32.mrf.mxu2  ;;  %v2254_v13 = vpop.f32.mrf.mxu1 }
 0x110   :  { %826 = vmatpush.bf16.msrb.mxu1 %v2039_v44 }
 0x111   :  { %894 = vmatpush.bf16.msrb.mxu2 %v2018_v17  ;;  %907 = vmatpush.bf16.msra.mxu3 %v2071_v23 }
 0x114   :  { %827 = vmatpush.bf16.msrb.mxu1 %v2045_v53 }
 0x115   :  { %895 = vmatpush.bf16.msrb.mxu2 %v2021_v25  ;;  %908 = vmatpush.bf16.msra.mxu3 %v2078_v35 }
 0x117   :  { %v2256_v14 = vpop.f32.mrf.mxu2  ;;  %v2258_v19 = vpop.f32.mrf.mxu1 }
 0x118   :  { %828 = vmatpush.bf16.msrb.mxu1 %v2051_v62  ;;  %2515 = vst [vmem:[#allocation20_spill] sm:$0xff] %v2258_v19 }
 0x119   :  { %896 = vmatpush.bf16.msrb.mxu2 %v2029_v32  ;;  %909 = vmatpush.bf16.msra.mxu3 %v2083_v39 }
 0x11c   :  { %829 = vmatpush.bf16.msrb.mxu1 %v2066_v15 }
 0x11d   :  { %897 = vmatpush.bf16.msrb.mxu2 %v2036_v41  ;;  %910 = vmatpush.bf16.msra.mxu3 %v2089_v45 }
 0x11f   :  { %v2260_v4 = vpop.f32.mrf.mxu2  ;;  %v2262_v20 = vpop.f32.mrf.mxu1 }
 0x120   :  { %830 = vmatpush.bf16.msrb.mxu1 %v2074_v24  ;;  %2516 = vst [vmem:[#allocation21_spill] sm:$0xff] %v2260_v4 }
 0x121   :  { %898 = vmatpush.bf16.msrb.mxu2 %v2042_v50  ;;  %911 = vmatpush.bf16.msra.mxu3 %v2099_v56  ;;  %2517 = vst [vmem:[#allocation22_spill] sm:$0xff] %v2262_v20 }
 0x124   :  { %831 = vmatpush.bf16.msrb.mxu1 %v2094_v55 }
 0x125   :  { %899 = vmatpush.bf16.msrb.mxu2 %v2048_v61  ;;  %912 = vmatpush.bf16.msra.mxu3 %v2108_v59 }
 0x127   :  { %v2264_v22 = vpop.f32.mrf.mxu2  ;;  %v2266_v28 = vpop.f32.mrf.mxu1 }
 0x128   :  { %2518 = vst [vmem:[#allocation23_spill] sm:$0xff] %v2264_v22 }
 0x129   :  { %2519 = vst [vmem:[#allocation24_spill] sm:$0xff] %v2266_v28 }
 0x12f   :  { %v2268_v29 = vpop.f32.mrf.mxu2  ;;  %v2270_v27 = vpop.f32.mrf.mxu1 }
 0x130   :  { %2520 = vst [vmem:[#allocation25_spill] sm:$0xff] %v2268_v29 }
 0x131   :  { %2521 = vst [vmem:[#allocation26_spill] sm:$0xff] %v2270_v27 }
 0x137   :  { %v2272_v30 = vpop.f32.mrf.mxu2 }
 0x138   :  { %2522 = vst [vmem:[#allocation27_spill] sm:$0xff] %v2272_v30 }
 0x184   :  { %v619_v36 = vpop.f32.mrf.mxu1 }
 0x185   :  { %v653_v38 = vadd.f32 %v619_v36, %v234_v37 }
 0x187   :  { %v1658_v40 = vmul.f32 -1.442695, %v653_v38 }
 0x189   :  { %1738 = vpow2.f32 %v1658_v40 }
 0x18a   :  { %v632_v47 = vpop.f32.mrf.mxu2 }
 0x18b   :  { %v673_v51 = vadd.f32 %v632_v47, %v268_v46  ;;  %v645_v54 = vpop.f32.mrf.mxu3 }
 0x18c   :  { %v621_v49 = vpop.f32.mrf.mxu1 }
 0x18d   :  { %v1659_v28 = vmul.f32 -1.442695, %v673_v51 }
 0x18f   :  { %v1739_v43 = vpop.eup %1738  ;;  %1740 = vpow2.f32 %v1659_v28 }
 0x190   :  { %v657_v29 = vadd.f32 1.0, %v1739_v43 }
 0x192   :  { %1742 = vrcp.f32 %v657_v29  ;;  %v634_v27 = vpop.f32.mrf.mxu2  ;;  %v669_v38 = vand.u32 2147483648, %v657_v29  ;;  %v667_v40 = vand.u32 2147483647, %v657_v29  ;;  %vm663_vm10 = vweird.f32 %v657_v29 }
 0x193   :  { %v647_v30 = vpop.f32.mrf.mxu3  ;;  %v693_v27 = vadd.f32 %v2210_v60, %v645_v54 }
 0x194   :  { %v670_v28 = vor.u32 1.1754944e-38, %v669_v38  ;;  %vm668_vm12 = vcmp.eq.f32.partialorder %v667_v40, 8.507059e+37 }
 0x195   :  { %v1741_v22 = vpop.eup %1740 }
 0x196   :  { %v677_v33 = vadd.f32 1.0, %v1741_v22  ;;  %v302_v22 = vadd.f32 %v301_v48, %v2205_v58 }
 0x198   :  { %v1743_v1 = vpop.eup %1742  ;;  %1744 = vrcp.f32 %v677_v33  ;;  %v687_v4 = vand.u32 2147483647, %v677_v33  ;;  %vm683_vm14 = vweird.f32 %v677_v33 }
 0x199   :  { %v659_v37 = vmul.f32 %v1743_v1, %v657_v29  ;;  %vm664_vm9 = vweird.f32 %v1743_v1 }
 0x19a   :  { %vm665_vm11 = vmor %vm663_vm10, %vm664_vm9  ;;  %vm688_vm0 = vcmp.eq.f32.partialorder %v687_v4, 8.507059e+37 }
 0x19b   :  { %v660_v36 = vsub.f32 1.0, %v659_v37  ;;  %v689_v37 = vand.u32 2147483648, %v677_v33 }
 0x19d   :  { %v661_v42 = vmul.f32 %v1743_v1, %v660_v36  ;;  %v690_v29 = vor.u32 1.1754944e-38, %v689_v37 }
 0x19e   :  { %v1745_v46 = vpop.eup %1744 }
 0x19f   :  { %v679_v47 = vmul.f32 %v1745_v46, %v677_v33  ;;  %v662_v49 = vadd.f32 %v1743_v1, %v661_v42  ;;  %vm684_vm13 = vweird.f32 %v1745_v46  ;;  %v271_v33 = vadd.f32 %v2242_v57, %v2194_v18 }
 0x1a0   :  { %vm685_vm15 = vmor %vm683_vm14, %vm684_vm13 }
 0x1a1   :  { %v680_v43 = vsub.f32 1.0, %v679_v47  ;;  %v666_v51 = vsel %vm665_vm11, %v1743_v1, %v662_v49 }
 0x1a2   :  { %v671_v30 = vsel %vm668_vm12, %v670_v28, %v666_v51 }
 0x1a3   :  { %v681_v20 = vmul.f32 %v1745_v46, %v680_v43  ;;  %v694_v36 = vmul.f32 %v693_v27, %v671_v30 }
 0x1a5   :  { %v695_v19 = vadd.f32 %v694_v36, %v302_v22  ;;  %v682_v21 = vadd.f32 %v1745_v46, %v681_v20 }
 0x1a7   :  { %1746 = vtanh.f32 %v695_v19  ;;  %v686_v38 = vsel %vm685_vm15, %v1745_v46, %v682_v21  ;;  %v237_v21 = vadd.f32 %v2183_v2, %v2187_v8 }
 0x1a8   :  { %v691_v1 = vsel %vm688_vm0, %v690_v29, %v686_v38 }
 0x1a9   :  { %v697_v42 = vsub.f32 1.0, %v691_v1  ;;  %v699_v48 = vmul.f32 %v691_v1, %v2214_v52 }
 0x1ad   :  { %v1747_v40 = vpop.eup %1746 }
 0x1ae   :  { %v698_v54 = vmul.f32 %v1747_v40, %v697_v42 }
 0x1b0   :  { %v2280_v47 = vadd.f32 %v699_v48, %v698_v54 }
 0x1b2   :  { %v701_v49 = vpack.c.bf16 %v2280_v47, %v2280_v47 }
 0x1b4   :  { %703 = vst [vmem:[#allocation11 + $0x4] sm:$0xf] %v701_v49  ;;  %712 = vmatmul.bf16.vlgmr.msra.gmra.mxu0 %v701_v49  ;;  %725 = vmatmul.bf16.vlgmr.msra.gmra.mxu1 %v701_v49 }
 0x1b5   :  { %738 = vmatmul.bf16.vlgmr.msra.gmra.mxu2 %v701_v49  ;;  %918 = vmatpush.bf16.msra.mxu0 %v2023_v26 }
 0x1b6   :  { %986 = vmatpush.bf16.msra.mxu1 %v2012_v7  ;;  %999 = vmatpush.bf16.msra.mxu2 %v2053_v63 }
 0x1b9   :  { %919 = vmatpush.bf16.msra.mxu0 %v2031_v34 }
 0x1ba   :  { %987 = vmatpush.bf16.msra.mxu1 %v2015_v11  ;;  %1000 = vmatpush.bf16.msra.mxu2 %v2060_v6 }
 0x1bd   :  { %920 = vmatpush.bf16.msra.mxu0 %v2039_v44 }
 0x1be   :  { %988 = vmatpush.bf16.msra.mxu1 %v2018_v17  ;;  %1001 = vmatpush.bf16.msra.mxu2 %v2071_v23 }
 0x1c1   :  { %921 = vmatpush.bf16.msra.mxu0 %v2045_v53 }
 0x1c2   :  { %989 = vmatpush.bf16.msra.mxu1 %v2021_v25  ;;  %1002 = vmatpush.bf16.msra.mxu2 %v2078_v35 }
 0x1c5   :  { %922 = vmatpush.bf16.msra.mxu0 %v2051_v62 }
 0x1c6   :  { %990 = vmatpush.bf16.msra.mxu1 %v2029_v32  ;;  %1003 = vmatpush.bf16.msra.mxu2 %v2083_v39 }
 0x1c9   :  { %923 = vmatpush.bf16.msra.mxu0 %v2066_v15 }
 0x1ca   :  { %991 = vmatpush.bf16.msra.mxu1 %v2036_v41  ;;  %1004 = vmatpush.bf16.msra.mxu2 %v2089_v45 }
 0x1cd   :  { %924 = vmatpush.bf16.msra.mxu0 %v2074_v24 }
 0x1ce   :  { %992 = vmatpush.bf16.msra.mxu1 %v2042_v50  ;;  %1005 = vmatpush.bf16.msra.mxu2 %v2099_v56 }
 0x1d1   :  { %925 = vmatpush.bf16.msra.mxu0 %v2094_v55 }
 0x1d2   :  { %993 = vmatpush.bf16.msra.mxu1 %v2048_v61  ;;  %1006 = vmatpush.bf16.msra.mxu2 %v2108_v59 }
 0x231   :  { %v713_v52 = vpop.f32.mrf.mxu0  ;;  %v726_v19 = vpop.f32.mrf.mxu1 }
 0x232   :  { %v747_v4 = vadd.f32 %v713_v52, %v237_v21  ;;  %v767_v20 = vadd.f32 %v726_v19, %v271_v33 }
 0x234   :  { %v1660_v46 = vmul.f32 -1.442695, %v747_v4  ;;  %v1661_v28 = vmul.f32 -1.442695, %v767_v20 }
 0x236   :  { %1748 = vpow2.f32 %v1660_v46 }
 0x237   :  { %1750 = vpow2.f32 %v1661_v28  ;;  %v305_v28 = vadd.f32 %v2244_v31, %v2205_v58 }
 0x238   :  { %v739_v43 = vpop.f32.mrf.mxu2 }
 0x239   :  { %v715_v51 = vpop.f32.mrf.mxu0  ;;  %v728_v27 = vpop.f32.mrf.mxu1  ;;  %v787_v4 = vadd.f32 %v2210_v60, %v739_v43 }
 0x23c   :  { %v1749_v22 = vpop.eup %1748 }
 0x23d   :  { %v1751_v30 = vpop.eup %1750  ;;  %v751_v37 = vadd.f32 1.0, %v1749_v22 }
 0x23e   :  { %v771_v36 = vadd.f32 1.0, %v1751_v30 }
 0x23f   :  { %1752 = vrcp.f32 %v751_v37  ;;  %v763_v54 = vand.u32 2147483648, %v751_v37  ;;  %v761_v49 = vand.u32 2147483647, %v751_v37  ;;  %vm757_vm2 = vweird.f32 %v751_v37 }
 0x240   :  { %1754 = vrcp.f32 %v771_v36  ;;  %v741_v2 = vpop.f32.mrf.mxu2  ;;  %v783_v51 = vand.u32 2147483648, %v771_v36  ;;  %vm777_vm6 = vweird.f32 %v771_v36  ;;  %v781_v22 = vand.u32 2147483647, %v771_v36 }
 0x241   :  { %v764_v52 = vor.u32 1.1754944e-38, %v763_v54  ;;  %vm762_vm4 = vcmp.eq.f32.partialorder %v761_v49, 8.507059e+37  ;;  %v239_v49 = vadd.f32 %v2185_v5, %v2187_v8 }
 0x242   :  { %vm782_vm8 = vcmp.eq.f32.partialorder %v781_v22, 8.507059e+37 }
 0x245   :  { %v1753_v29 = vpop.eup %1752 }
 0x246   :  { %v1755_v57 = vpop.eup %1754  ;;  %v753_v38 = vmul.f32 %v1753_v29, %v751_v37  ;;  %vm758_vm1 = vweird.f32 %v1753_v29  ;;  %v784_v37 = vor.u32 1.1754944e-38, %v783_v51 }
 0x247   :  { %v773_v1 = vmul.f32 %v1755_v57, %v771_v36  ;;  %vm759_vm3 = vmor %vm757_vm2, %vm758_vm1  ;;  %vm778_vm5 = vweird.f32 %v1755_v57 }
 0x248   :  { %v754_v42 = vsub.f32 1.0, %v753_v38  ;;  %vm779_vm7 = vmor %vm777_vm6, %vm778_vm5 }
 0x249   :  { %v774_v40 = vsub.f32 1.0, %v773_v1 }
 0x24a   :  { %v755_v48 = vmul.f32 %v1753_v29, %v754_v42 }
 0x24b   :  { %v775_v21 = vmul.f32 %v1755_v57, %v774_v40 }
 0x24c   :  { %v756_v33 = vadd.f32 %v1753_v29, %v755_v48 }
 0x24d   :  { %v776_v46 = vadd.f32 %v1755_v57, %v775_v21 }
 0x24e   :  { %v760_v19 = vsel %vm759_vm3, %v1753_v29, %v756_v33 }
 0x24f   :  { %v765_v20 = vsel %vm762_vm4, %v764_v52, %v760_v19  ;;  %v780_v2 = vsel %vm779_vm7, %v1755_v57, %v776_v46 }
 0x250   :  { %v788_v27 = vmul.f32 %v787_v4, %v765_v20  ;;  %v785_v29 = vsel %vm782_vm8, %v784_v37, %v780_v2 }
 0x251   :  { %v791_v38 = vsub.f32 1.0, %v785_v29  ;;  %v793_v42 = vmul.f32 %v785_v29, %v2280_v47  ;;  %v273_v47 = vadd.f32 %v2246_v0, %v2194_v18 }
 0x252   :  { %v789_v30 = vadd.f32 %v788_v27, %v305_v28 }
 0x254   :  { %1756 = vtanh.f32 %v789_v30 }
 0x25a   :  { %v1757_v1 = vpop.eup %1756 }
 0x25b   :  { %v792_v43 = vmul.f32 %v1757_v1, %v791_v38 }
 0x25d   :  { %v2316_v40 = vadd.f32 %v793_v42, %v792_v43 }
 0x25f   :  { %v795_v31 = vpack.c.bf16 %v2316_v40, %v2316_v40 }
 0x261   :  { %797 = vst [vmem:[#allocation11 + $0x8] sm:$0xf] %v795_v31  ;;  %806 = vmatmul.bf16.vlgmr.msrb.gmra.mxu3 %v795_v31  ;;  %819 = vmatmul.bf16.vlgmr.msrb.gmra.mxu0 %v795_v31 }
 0x262   :  { %832 = vmatmul.bf16.vlgmr.msrb.gmra.mxu1 %v795_v31  ;;  %1012 = vmatpush.bf16.msrb.mxu3 %v2023_v26 }
 0x263   :  { %1080 = vmatpush.bf16.msrb.mxu0 %v2012_v7  ;;  %1093 = vmatpush.bf16.msrb.mxu1 %v2053_v63 }
 0x266   :  { %1013 = vmatpush.bf16.msrb.mxu3 %v2031_v34 }
 0x267   :  { %1081 = vmatpush.bf16.msrb.mxu0 %v2015_v11  ;;  %1094 = vmatpush.bf16.msrb.mxu1 %v2060_v6 }
 0x26a   :  { %1014 = vmatpush.bf16.msrb.mxu3 %v2039_v44 }
 0x26b   :  { %1082 = vmatpush.bf16.msrb.mxu0 %v2018_v17  ;;  %1095 = vmatpush.bf16.msrb.mxu1 %v2071_v23 }
 0x26e   :  { %1015 = vmatpush.bf16.msrb.mxu3 %v2045_v53 }
 0x26f   :  { %1083 = vmatpush.bf16.msrb.mxu0 %v2021_v25  ;;  %1096 = vmatpush.bf16.msrb.mxu1 %v2078_v35 }
 0x272   :  { %1016 = vmatpush.bf16.msrb.mxu3 %v2051_v62 }
 0x273   :  { %1084 = vmatpush.bf16.msrb.mxu0 %v2029_v32  ;;  %1097 = vmatpush.bf16.msrb.mxu1 %v2083_v39 }
 0x276   :  { %1017 = vmatpush.bf16.msrb.mxu3 %v2066_v15 }
 0x277   :  { %1085 = vmatpush.bf16.msrb.mxu0 %v2036_v41  ;;  %1098 = vmatpush.bf16.msrb.mxu1 %v2089_v45 }
 0x27a   :  { %1018 = vmatpush.bf16.msrb.mxu3 %v2074_v24 }
 0x27b   :  { %1086 = vmatpush.bf16.msrb.mxu0 %v2042_v50  ;;  %1099 = vmatpush.bf16.msrb.mxu1 %v2099_v56 }
 0x27e   :  { %1019 = vmatpush.bf16.msrb.mxu3 %v2094_v55 }
 0x27f   :  { %1087 = vmatpush.bf16.msrb.mxu0 %v2048_v61  ;;  %1100 = vmatpush.bf16.msrb.mxu1 %v2108_v59 }
 0x2de   :  { %v820_v36 = vpop.f32.mrf.mxu0 }
 0x2df   :  { %v861_v57 = vadd.f32 %v820_v36, %v273_v47  ;;  %v833_v54 = vpop.f32.mrf.mxu1 }
 0x2e0   :  { %v881_v47 = vadd.f32 %v2210_v60, %v833_v54 }
 0x2e1   :  { %v1663_v48 = vmul.f32 -1.442695, %v861_v57 }
 0x2e3   :  { %1758 = vpow2.f32 %v1663_v48 }
 0x2e4   :  { %v807_v21 = vpop.f32.mrf.mxu3 }
 0x2e5   :  { %v841_v33 = vadd.f32 %v807_v21, %v239_v49  ;;  %v307_v49 = vadd.f32 %v2248_v3, %v2205_v58 }
 0x2e6   :  { %v822_v52 = vpop.f32.mrf.mxu0 }
 0x2e7   :  { %v1662_v19 = vmul.f32 -1.442695, %v841_v33  ;;  %v835_v4 = vpop.f32.mrf.mxu1 }
 0x2e9   :  { %v1759_v20 = vpop.eup %1758  ;;  %1760 = vpow2.f32 %v1662_v19 }
 0x2ea   :  { %v865_v46 = vadd.f32 1.0, %v1759_v20 }
 0x2ec   :  { %v809_v28 = vpop.f32.mrf.mxu3  ;;  %1762 = vrcp.f32 %v865_v46  ;;  %v877_v21 = vand.u32 2147483648, %v865_v46  ;;  %vm871_vm14 = vweird.f32 %v865_v46  ;;  %v875_v52 = vand.u32 2147483647, %v865_v46 }
 0x2ee   :  { %v878_v20 = vor.u32 1.1754944e-38, %v877_v21  ;;  %vm876_vm0 = vcmp.eq.f32.partialorder %v875_v52, 8.507059e+37 }
 0x2ef   :  { %v1761_v51 = vpop.eup %1760 }
 0x2f0   :  { %v845_v0 = vadd.f32 1.0, %v1761_v51 }
 0x2f2   :  { %1764 = vrcp.f32 %v845_v0  ;;  %v1763_v27 = vpop.eup %1762  ;;  %v857_v29 = vand.u32 2147483648, %v845_v0  ;;  %v855_v1 = vand.u32 2147483647, %v845_v0  ;;  %vm851_vm10 = vweird.f32 %v845_v0 }
 0x2f3   :  { %v867_v22 = vmul.f32 %v1763_v27, %v865_v46  ;;  %vm872_vm13 = vweird.f32 %v1763_v27  ;;  %v242_v46 = vadd.f32 %v2190_v12, %v2187_v8 }
 0x2f4   :  { %v858_v31 = vor.u32 1.1754944e-38, %v857_v29  ;;  %vm856_vm12 = vcmp.eq.f32.partialorder %v855_v1, 8.507059e+37  ;;  %vm873_vm15 = vmor %vm871_vm14, %vm872_vm13 }
 0x2f5   :  { %v868_v37 = vsub.f32 1.0, %v867_v22 }
 0x2f7   :  { %v869_v43 = vmul.f32 %v1763_v27, %v868_v37 }
 0x2f8   :  { %v1765_v30 = vpop.eup %1764 }
 0x2f9   :  { %v847_v2 = vmul.f32 %v1765_v30, %v845_v0  ;;  %vm852_vm9 = vweird.f32 %v1765_v30  ;;  %v870_v48 = vadd.f32 %v1763_v27, %v869_v43 }
 0x2fa   :  { %vm853_vm11 = vmor %vm851_vm10, %vm852_vm9 }
 0x2fb   :  { %v848_v5 = vsub.f32 1.0, %v847_v2  ;;  %v874_v4 = vsel %vm873_vm15, %v1763_v27, %v870_v48  ;;  %v276_v27 = vadd.f32 %v2250_v9, %v2194_v18 }
 0x2fc   :  { %v879_v28 = vsel %vm876_vm0, %v878_v20, %v874_v4 }
 0x2fd   :  { %v849_v38 = vmul.f32 %v1765_v30, %v848_v5  ;;  %v885_v54 = vsub.f32 1.0, %v879_v28  ;;  %v887_v22 = vmul.f32 %v879_v28, %v2316_v40 }
 0x2ff   :  { %v850_v42 = vadd.f32 %v1765_v30, %v849_v38 }
 0x301   :  { %v854_v36 = vsel %vm853_vm11, %v1765_v30, %v850_v42 }
 0x302   :  { %v859_v57 = vsel %vm856_vm12, %v858_v31, %v854_v36 }
 0x303   :  { %v882_v33 = vmul.f32 %v881_v47, %v859_v57 }
 0x305   :  { %v883_v19 = vadd.f32 %v882_v33, %v307_v49 }
 0x307   :  { %1766 = vtanh.f32 %v883_v19 }
 0x30d   :  { %v1767_v51 = vpop.eup %1766 }
 0x30e   :  { %v886_v0 = vmul.f32 %v1767_v51, %v885_v54 }
 0x310   :  { %v2352_v30 = vadd.f32 %v887_v22, %v886_v0 }
 0x312   :  { %v889_v3 = vpack.c.bf16 %v2352_v30, %v2352_v30 }
 0x314   :  { %891 = vst [vmem:[#allocation11 + $0xc] sm:$0xf] %v889_v3  ;;  %900 = vmatmul.bf16.vlgmr.msrb.gmra.mxu2 %v889_v3  ;;  %913 = vmatmul.bf16.vlgmr.msra.gmra.mxu3 %v889_v3 }
 0x315   :  { %926 = vmatmul.bf16.vlgmr.msra.gmra.mxu0 %v889_v3  ;;  %1106 = vmatpush.bf16.msrb.mxu2 %v2023_v26 }
 0x316   :  { %1174 = vmatpush.bf16.msra.mxu3 %v2012_v7  ;;  %1187 = vmatpush.bf16.msra.mxu0 %v2053_v63 }
 0x319   :  { %1107 = vmatpush.bf16.msrb.mxu2 %v2031_v34 }
 0x31a   :  { %1175 = vmatpush.bf16.msra.mxu3 %v2015_v11  ;;  %1188 = vmatpush.bf16.msra.mxu0 %v2060_v6 }
 0x31d   :  { %1108 = vmatpush.bf16.msrb.mxu2 %v2039_v44 }
 0x31e   :  { %1176 = vmatpush.bf16.msra.mxu3 %v2018_v17  ;;  %1189 = vmatpush.bf16.msra.mxu0 %v2071_v23 }
 0x321   :  { %1109 = vmatpush.bf16.msrb.mxu2 %v2045_v53 }
 0x322   :  { %1177 = vmatpush.bf16.msra.mxu3 %v2021_v25  ;;  %1190 = vmatpush.bf16.msra.mxu0 %v2078_v35 }
 0x325   :  { %1110 = vmatpush.bf16.msrb.mxu2 %v2051_v62 }
 0x326   :  { %1178 = vmatpush.bf16.msra.mxu3 %v2029_v32  ;;  %1191 = vmatpush.bf16.msra.mxu0 %v2083_v39 }
 0x329   :  { %1111 = vmatpush.bf16.msrb.mxu2 %v2066_v15 }
 0x32a   :  { %1179 = vmatpush.bf16.msra.mxu3 %v2036_v41  ;;  %1192 = vmatpush.bf16.msra.mxu0 %v2089_v45 }
 0x32d   :  { %1112 = vmatpush.bf16.msrb.mxu2 %v2074_v24 }
 0x32e   :  { %1180 = vmatpush.bf16.msra.mxu3 %v2042_v50  ;;  %1193 = vmatpush.bf16.msra.mxu0 %v2099_v56 }
 0x331   :  { %1113 = vmatpush.bf16.msrb.mxu2 %v2094_v55 }
 0x332   :  { %1181 = vmatpush.bf16.msra.mxu3 %v2048_v61  ;;  %1194 = vmatpush.bf16.msra.mxu0 %v2108_v59 }
 0x392   :  { %v927_v40 = vpop.f32.mrf.mxu0 }
 0x393   :  { %v975_v0 = vadd.f32 %v2210_v60, %v927_v40 }
 0x397   :  { %v901_v2 = vpop.f32.mrf.mxu2  ;;  %v914_v37 = vpop.f32.mrf.mxu3 }
 0x398   :  { %v935_v5 = vadd.f32 %v901_v2, %v242_v46  ;;  %v955_v29 = vadd.f32 %v914_v37, %v276_v27  ;;  %v310_v27 = vadd.f32 %v2252_v10, %v2205_v58 }
 0x39a   :  { %v1664_v38 = vmul.f32 -1.442695, %v935_v5  ;;  %v1665_v1 = vmul.f32 -1.442695, %v955_v29  ;;  %v929_v43 = vpop.f32.mrf.mxu0 }
 0x39c   :  { %1768 = vpow2.f32 %v1664_v38 }
 0x39d   :  { %1770 = vpow2.f32 %v1665_v1 }
 0x39f   :  { %v903_v42 = vpop.f32.mrf.mxu2  ;;  %v916_v31 = vpop.f32.mrf.mxu3 }
 0x3a2   :  { %v1769_v47 = vpop.eup %1768 }
 0x3a3   :  { %v1771_v36 = vpop.eup %1770  ;;  %v939_v57 = vadd.f32 1.0, %v1769_v47 }
 0x3a4   :  { %v959_v48 = vadd.f32 1.0, %v1771_v36 }
 0x3a5   :  { %1772 = vrcp.f32 %v939_v57  ;;  %v951_v52 = vand.u32 2147483648, %v939_v57  ;;  %v949_v20 = vand.u32 2147483647, %v939_v57  ;;  %vm945_vm2 = vweird.f32 %v939_v57 }
 0x3a6   :  { %1774 = vrcp.f32 %v959_v48  ;;  %v971_v37 = vand.u32 2147483648, %v959_v48  ;;  %vm965_vm6 = vweird.f32 %v959_v48  ;;  %v969_v5 = vand.u32 2147483647, %v959_v48 }
 0x3a7   :  { %v952_v51 = vor.u32 1.1754944e-38, %v951_v52  ;;  %vm950_vm4 = vcmp.eq.f32.partialorder %v949_v20, 8.507059e+37 }
 0x3a8   :  { %v972_v1 = vor.u32 1.1754944e-38, %v971_v37  ;;  %vm970_vm8 = vcmp.eq.f32.partialorder %v969_v5, 8.507059e+37 }
 0x3ab   :  { %v1773_v12 = vpop.eup %1772 }
 0x3ac   :  { %v1775_v49 = vpop.eup %1774  ;;  %v941_v9 = vmul.f32 %v1773_v12, %v939_v57  ;;  %vm946_vm1 = vweird.f32 %v1773_v12 }
 0x3ad   :  { %v961_v21 = vmul.f32 %v1775_v49, %v959_v48  ;;  %vm947_vm3 = vmor %vm945_vm2, %vm946_vm1  ;;  %vm966_vm5 = vweird.f32 %v1775_v49 }
 0x3ae   :  { %v942_v33 = vsub.f32 1.0, %v941_v9  ;;  %vm967_vm7 = vmor %vm965_vm6, %vm966_vm5 }
 0x3af   :  { %v962_v19 = vsub.f32 1.0, %v961_v21 }
 0x3b0   :  { %v943_v4 = vmul.f32 %v1773_v12, %v942_v33 }
 0x3b1   :  { %v963_v28 = vmul.f32 %v1775_v49, %v962_v19 }
 0x3b2   :  { %v944_v54 = vadd.f32 %v1773_v12, %v943_v4 }
 0x3b3   :  { %v964_v46 = vadd.f32 %v1775_v49, %v963_v28 }
 0x3b4   :  { %v948_v22 = vsel %vm947_vm3, %v1773_v12, %v944_v54 }
 0x3b5   :  { %v953_v3 = vsel %vm950_vm4, %v952_v51, %v948_v22  ;;  %v968_v38 = vsel %vm967_vm7, %v1775_v49, %v964_v46  ;;  %v278_v49 = vadd.f32 %v2254_v13, %v2194_v18 }
 0x3b6   :  { %v976_v2 = vmul.f32 %v975_v0, %v953_v3  ;;  %v973_v43 = vsel %vm970_vm8, %v972_v1, %v968_v38 }
 0x3b7   :  { %v979_v40 = vsub.f32 1.0, %v973_v43  ;;  %v981_v47 = vmul.f32 %v973_v43, %v2352_v30  ;;  %v244_v30 = vadd.f32 %v2192_v16, %v2187_v8 }
 0x3b8   :  { %v977_v29 = vadd.f32 %v976_v2, %v310_v27 }
 0x3ba   :  { %1776 = vtanh.f32 %v977_v29 }
 0x3c0   :  { %v1777_v42 = vpop.eup %1776 }
 0x3c1   :  { %v980_v31 = vmul.f32 %v1777_v42, %v979_v40  ;;  %v312_v40 = vadd.f32 %v2256_v14, %v2205_v58 }
 0x3c3   :  { %v2388_v36 = vadd.f32 %v981_v47, %v980_v31 }
 0x3c5   :  { %v983_v10 = vpack.c.bf16 %v2388_v36, %v2388_v36 }
 0x3c7   :  { %985 = vst [vmem:[#allocation11 + $0x10] sm:$0xf] %v983_v10  ;;  %994 = vmatmul.bf16.vlgmr.msra.gmra.mxu1 %v983_v10  ;;  %1007 = vmatmul.bf16.vlgmr.msra.gmra.mxu2 %v983_v10 }
 0x3c8   :  { %1020 = vmatmul.bf16.vlgmr.msrb.gmra.mxu3 %v983_v10  ;;  %1200 = vmatpush.bf16.msra.mxu1 %v2023_v26 }
 0x3c9   :  { %1268 = vmatpush.bf16.msra.mxu2 %v2012_v7  ;;  %1281 = vmatpush.bf16.msrb.mxu3 %v2053_v63 }
 0x3cc   :  { %1201 = vmatpush.bf16.msra.mxu1 %v2031_v34 }
 0x3cd   :  { %1269 = vmatpush.bf16.msra.mxu2 %v2015_v11  ;;  %1282 = vmatpush.bf16.msrb.mxu3 %v2060_v6 }
 0x3d0   :  { %1202 = vmatpush.bf16.msra.mxu1 %v2039_v44 }
 0x3d1   :  { %1270 = vmatpush.bf16.msra.mxu2 %v2018_v17  ;;  %1283 = vmatpush.bf16.msrb.mxu3 %v2071_v23 }
 0x3d4   :  { %1203 = vmatpush.bf16.msra.mxu1 %v2045_v53 }
 0x3d5   :  { %1271 = vmatpush.bf16.msra.mxu2 %v2021_v25  ;;  %1284 = vmatpush.bf16.msrb.mxu3 %v2078_v35 }
 0x3d8   :  { %1204 = vmatpush.bf16.msra.mxu1 %v2051_v62 }
 0x3d9   :  { %1272 = vmatpush.bf16.msra.mxu2 %v2029_v32  ;;  %1285 = vmatpush.bf16.msrb.mxu3 %v2083_v39 }
 0x3dc   :  { %1205 = vmatpush.bf16.msra.mxu1 %v2066_v15 }
 0x3dd   :  { %1273 = vmatpush.bf16.msra.mxu2 %v2036_v41  ;;  %1286 = vmatpush.bf16.msrb.mxu3 %v2089_v45 }
 0x3e0   :  { %1206 = vmatpush.bf16.msra.mxu1 %v2074_v24 }
 0x3e1   :  { %1274 = vmatpush.bf16.msra.mxu2 %v2042_v50  ;;  %1287 = vmatpush.bf16.msrb.mxu3 %v2099_v56 }
 0x3e4   :  { %1207 = vmatpush.bf16.msra.mxu1 %v2094_v55 }
 0x3e5   :  { %1275 = vmatpush.bf16.msra.mxu2 %v2048_v61  ;;  %1288 = vmatpush.bf16.msrb.mxu3 %v2108_v59 }
 0x444   :  { %v995_v57 = vpop.f32.mrf.mxu1 }
 0x445   :  { %v1029_v48 = vadd.f32 %v995_v57, %v244_v30 }
 0x447   :  { %v1666_v12 = vmul.f32 -1.442695, %v1029_v48 }
 0x449   :  { %1778 = vpow2.f32 %v1666_v12 }
 0x44a   :  { %v1008_v9 = vpop.f32.mrf.mxu2 }
 0x44b   :  { %v1049_v21 = vadd.f32 %v1008_v9, %v278_v49  ;;  %v1021_v33 = vpop.f32.mrf.mxu3 }
 0x44c   :  { %v997_v52 = vpop.f32.mrf.mxu1  ;;  %v1069_v43 = vadd.f32 %v2210_v60, %v1021_v33 }
 0x44d   :  { %v1667_v19 = vmul.f32 -1.442695, %v1049_v21 }
 0x44f   :  { %v1779_v4 = vpop.eup %1778  ;;  %1780 = vpow2.f32 %v1667_v19 }
 0x450   :  { %v1033_v20 = vadd.f32 1.0, %v1779_v4 }
 0x452   :  { %1782 = vrcp.f32 %v1033_v20  ;;  %v1010_v28 = vpop.f32.mrf.mxu2  ;;  %v1045_v46 = vand.u32 2147483648, %v1033_v20  ;;  %v1043_v27 = vand.u32 2147483647, %v1033_v20  ;;  %vm1039_vm10 = vweird.f32 %v1033_v20 }
 0x453   :  { %v1023_v54 = vpop.f32.mrf.mxu3 }
 0x454   :  { %v1046_v29 = vor.u32 1.1754944e-38, %v1045_v46  ;;  %vm1044_vm12 = vcmp.eq.f32.partialorder %v1043_v27, 8.507059e+37 }
 0x455   :  { %v1781_v51 = vpop.eup %1780 }
 0x456   :  { %v1053_v16 = vadd.f32 1.0, %v1781_v51 }
 0x458   :  { %v1783_v0 = vpop.eup %1782  ;;  %1784 = vrcp.f32 %v1053_v16  ;;  %v1065_v47 = vand.u32 2147483648, %v1053_v16  ;;  %v1063_v30 = vand.u32 2147483647, %v1053_v16  ;;  %vm1059_vm14 = vweird.f32 %v1053_v16 }
 0x459   :  { %v1035_v22 = vmul.f32 %v1783_v0, %v1033_v20  ;;  %vm1040_vm9 = vweird.f32 %v1783_v0 }
 0x45a   :  { %vm1041_vm11 = vmor %vm1039_vm10, %vm1040_vm9  ;;  %v1066_v12 = vor.u32 1.1754944e-38, %v1065_v47  ;;  %vm1064_vm0 = vcmp.eq.f32.partialorder %v1063_v30, 8.507059e+37 }
 0x45b   :  { %v1036_v3 = vsub.f32 1.0, %v1035_v22 }
 0x45d   :  { %v1037_v13 = vmul.f32 %v1783_v0, %v1036_v3 }
 0x45e   :  { %v1785_v2 = vpop.eup %1784 }
 0x45f   :  { %v1055_v37 = vmul.f32 %v1785_v2, %v1053_v16  ;;  %v1038_v5 = vadd.f32 %v1783_v0, %v1037_v13  ;;  %vm1060_vm13 = vweird.f32 %v1785_v2 }
 0x460   :  { %vm1061_vm15 = vmor %vm1059_vm14, %vm1060_vm13 }
 0x461   :  { %v1056_v38 = vsub.f32 1.0, %v1055_v37  ;;  %v1042_v1 = vsel %vm1041_vm11, %v1783_v0, %v1038_v5  ;;  %v2459_v5 = vld [vmem:[%s2509_s4] ss:$0 sm:$0xff]  ;;  %s1966_s4 = smov [#allocation11]  }
 0x462   :  { %v1047_v42 = vsel %vm1044_vm12, %v1046_v29, %v1042_v1  ;;  %s1460_s17 = sshll.u32 %s1966_s4, 4  ;;  %s1461_s17 = int_to_ptr.vmem [resolvable:$true] %s1460_s17 }
 0x463   :  { %v1057_v31 = vmul.f32 %v1785_v2, %v1056_v38  ;;  %v1070_v10 = vmul.f32 %v1069_v43, %v1047_v42  ;;  %v2525_v43 = vld [vmem:[#allocation21_spill] sm:$0xff] }
 0x465   :  { %v1071_v57 = vadd.f32 %v1070_v10, %v312_v40  ;;  %v1058_v48 = vadd.f32 %v1785_v2, %v1057_v31  ;;  %v315_v40 = vadd.f32 %v2525_v43, %v2205_v58 }
 0x467   :  { %1786 = vtanh.f32 %v1071_v57  ;;  %v1062_v49 = vsel %vm1061_vm15, %v1785_v2, %v1058_v48 }
 0x468   :  { %v1067_v9 = vsel %vm1064_vm0, %v1066_v12, %v1062_v49 }
 0x469   :  { %v1073_v21 = vsub.f32 1.0, %v1067_v9  ;;  %v1075_v14 = vmul.f32 %v1067_v9, %v2388_v36 }
 0x46d   :  { %v1787_v60 = vpop.eup %1786 }
 0x46e   :  { %v1074_v33 = vmul.f32 %v1787_v60, %v1073_v21 }
 0x470   :  { %v2424_v52 = vadd.f32 %v1075_v14, %v1074_v33  ;;  %v2526_v14 = vld [vmem:[#allocation22_spill] sm:$0xff] }
 0x472   :  { %v1077_v19 = vpack.c.bf16 %v2424_v52, %v2424_v52 }
 0x474   :  { %1079 = vst [vmem:[#allocation11 + $0x14] sm:$0xf] %v1077_v19  ;;  %1088 = vmatmul.bf16.vlgmr.msrb.gmra.mxu0 %v1077_v19  ;;  %1101 = vmatmul.bf16.vlgmr.msrb.gmra.mxu1 %v1077_v19 }
 0x475   :  { %1114 = vmatmul.bf16.vlgmr.msrb.gmra.mxu2 %v1077_v19  ;;  %1294 = vmatpush.bf16.msrb.mxu0 %v2023_v26 }
 0x476   :  { %1362 = vmatpush.bf16.msrb.mxu1 %v2012_v7  ;;  %1375 = vmatpush.bf16.msrb.mxu2 %v2053_v63  ;;  %v2523_v7 = vld [vmem:[#allocation16_spill] sm:$0xff] }
 0x479   :  { %1295 = vmatpush.bf16.msrb.mxu0 %v2031_v34 }
 0x47a   :  { %1363 = vmatpush.bf16.msrb.mxu1 %v2015_v11  ;;  %1376 = vmatpush.bf16.msrb.mxu2 %v2060_v6  ;;  %v247_v11 = vadd.f32 %v2523_v7, %v2187_v8 }
 0x47d   :  { %1296 = vmatpush.bf16.msrb.mxu0 %v2039_v44 }
 0x47e   :  { %1364 = vmatpush.bf16.msrb.mxu1 %v2018_v17  ;;  %1377 = vmatpush.bf16.msrb.mxu2 %v2071_v23  ;;  %v2524_v17 = vld [vmem:[#allocation20_spill] sm:$0xff] }
 0x481   :  { %1297 = vmatpush.bf16.msrb.mxu0 %v2045_v53 }
 0x482   :  { %1365 = vmatpush.bf16.msrb.mxu1 %v2021_v25  ;;  %1378 = vmatpush.bf16.msrb.mxu2 %v2078_v35  ;;  %v281_v25 = vadd.f32 %v2524_v17, %v2194_v18 }
 0x485   :  { %1298 = vmatpush.bf16.msrb.mxu0 %v2051_v62 }
 0x486   :  { %1366 = vmatpush.bf16.msrb.mxu1 %v2029_v32  ;;  %1379 = vmatpush.bf16.msrb.mxu2 %v2083_v39 }
 0x489   :  { %1299 = vmatpush.bf16.msrb.mxu0 %v2066_v15 }
 0x48a   :  { %1367 = vmatpush.bf16.msrb.mxu1 %v2036_v41  ;;  %1380 = vmatpush.bf16.msrb.mxu2 %v2089_v45 }
 0x48d   :  { %1300 = vmatpush.bf16.msrb.mxu0 %v2074_v24 }
 0x48e   :  { %1368 = vmatpush.bf16.msrb.mxu1 %v2042_v50  ;;  %1381 = vmatpush.bf16.msrb.mxu2 %v2099_v56 }
 0x491   :  { %1301 = vmatpush.bf16.msrb.mxu0 %v2094_v55 }
 0x492   :  { %1369 = vmatpush.bf16.msrb.mxu1 %v2048_v61  ;;  %1382 = vmatpush.bf16.msrb.mxu2 %v2108_v59 }
 0x4f1   :  { %v1089_v32 = vpop.f32.mrf.mxu0  ;;  %v1102_v41 = vpop.f32.mrf.mxu1 }
 0x4f2   :  { %v1123_v63 = vadd.f32 %v1089_v32, %v247_v11  ;;  %v1143_v6 = vadd.f32 %v1102_v41, %v281_v25 }
 0x4f4   :  { %v1668_v23 = vmul.f32 -1.442695, %v1123_v63  ;;  %v1669_v50 = vmul.f32 -1.442695, %v1143_v6 }
 0x4f6   :  { %1788 = vpow2.f32 %v1668_v23 }
 0x4f7   :  { %1790 = vpow2.f32 %v1669_v50 }
 0x4f8   :  { %v1115_v35 = vpop.f32.mrf.mxu2 }
 0x4f9   :  { %v1091_v39 = vpop.f32.mrf.mxu0  ;;  %v1104_v45 = vpop.f32.mrf.mxu1  ;;  %v1163_v29 = vadd.f32 %v2459_v5, %v1115_v35 }
 0x4fc   :  { %v1789_v61 = vpop.eup %1788 }
 0x4fd   :  { %v1791_v56 = vpop.eup %1790  ;;  %v1127_v59 = vadd.f32 1.0, %v1789_v61 }
 0x4fe   :  { %v1147_v36 = vadd.f32 1.0, %v1791_v56 }
 0x4ff   :  { %1792 = vrcp.f32 %v1127_v59  ;;  %v1139_v22 = vand.u32 2147483648, %v1127_v59  ;;  %v1137_v46 = vand.u32 2147483647, %v1127_v59  ;;  %vm1133_vm2 = vweird.f32 %v1127_v59 }
 0x500   :  { %1794 = vrcp.f32 %v1147_v36  ;;  %v1117_v4 = vpop.f32.mrf.mxu2  ;;  %v1159_v42 = vand.u32 2147483648, %v1147_v36  ;;  %vm1153_vm6 = vweird.f32 %v1147_v36  ;;  %v1157_v47 = vand.u32 2147483647, %v1147_v36 }
 0x501   :  { %v1140_v2 = vor.u32 1.1754944e-38, %v1139_v22  ;;  %vm1138_vm4 = vcmp.eq.f32.partialorder %v1137_v46, 8.507059e+37 }
 0x502   :  { %v1160_v57 = vor.u32 1.1754944e-38, %v1159_v42  ;;  %vm1158_vm8 = vcmp.eq.f32.partialorder %v1157_v47, 8.507059e+37 }
 0x505   :  { %v1793_v20 = vpop.eup %1792 }
 0x506   :  { %v1795_v28 = vpop.eup %1794  ;;  %v1129_v54 = vmul.f32 %v1793_v20, %v1127_v59  ;;  %vm1134_vm1 = vweird.f32 %v1793_v20 }
 0x507   :  { %v1149_v51 = vmul.f32 %v1795_v28, %v1147_v36  ;;  %vm1135_vm3 = vmor %vm1133_vm2, %vm1134_vm1  ;;  %vm1154_vm5 = vweird.f32 %v1795_v28 }
 0x508   :  { %v1130_v16 = vsub.f32 1.0, %v1129_v54  ;;  %vm1155_vm7 = vmor %vm1153_vm6, %vm1154_vm5 }
 0x509   :  { %v1150_v0 = vsub.f32 1.0, %v1149_v51 }
 0x50a   :  { %v1131_v3 = vmul.f32 %v1793_v20, %v1130_v16 }
 0x50b   :  { %v1151_v13 = vmul.f32 %v1795_v28, %v1150_v0  ;;  %v2528_v0 = vld [vmem:[#allocation23_spill] sm:$0xff] }
 0x50c   :  { %v1132_v27 = vadd.f32 %v1793_v20, %v1131_v3  ;;  %v317_v22 = vadd.f32 %v2528_v0, %v2205_v58 }
 0x50d   :  { %v1152_v1 = vadd.f32 %v1795_v28, %v1151_v13 }
 0x50e   :  { %v1136_v37 = vsel %vm1135_vm3, %v1793_v20, %v1132_v27 }
 0x50f   :  { %v1141_v38 = vsel %vm1138_vm4, %v1140_v2, %v1136_v37  ;;  %v1156_v30 = vsel %vm1155_vm7, %v1795_v28, %v1152_v1 }
 0x510   :  { %v1164_v31 = vmul.f32 %v1163_v29, %v1141_v38  ;;  %v1161_v48 = vsel %vm1158_vm8, %v1160_v57, %v1156_v30  ;;  %v2530_v57 = vld [vmem:[#allocation24_spill] sm:$0xff] }
 0x511   :  { %v1167_v12 = vsub.f32 1.0, %v1161_v48  ;;  %v1169_v21 = vmul.f32 %v1161_v48, %v2424_v52  ;;  %v283_v52 = vadd.f32 %v2526_v14, %v2194_v18  ;;  %v286_v48 = vadd.f32 %v2530_v57, %v2194_v18 }
 0x512   :  { %v1165_v10 = vadd.f32 %v1164_v31, %v315_v40 }
 0x514   :  { %1796 = vtanh.f32 %v1165_v10  ;;  %v2529_v10 = vld [vmem:[#allocation18_spill] sm:$0xff] }
 0x515   :  { %v252_v30 = vadd.f32 %v2529_v10, %v2187_v8 }
 0x51a   :  { %v1797_v49 = vpop.eup %1796 }
 0x51b   :  { %v1168_v9 = vmul.f32 %v1797_v49, %v1167_v12 }
 0x51d   :  { %v2465_v60 = vadd.f32 %v1169_v21, %v1168_v9 }
 0x51f   :  { %v1171_v33 = vpack.c.bf16 %v2465_v60, %v2465_v60 }
 0x521   :  { %1173 = vst [vmem:[#allocation11 + $0x18] sm:$0xf] %v1171_v33  ;;  %1182 = vmatmul.bf16.vlgmr.msra.gmra.mxu3 %v1171_v33  ;;  %1195 = vmatmul.bf16.vlgmr.msra.gmra.mxu0 %v1171_v33 }
 0x522   :  { %1208 = vmatmul.bf16.vlgmr.msra.gmra.mxu1 %v1171_v33  ;;  %1388 = vmatpush.bf16.msra.mxu3 %v2023_v26 }
 0x526   :  { %1389 = vmatpush.bf16.msra.mxu3 %v2031_v34  ;;  %v2527_v34 = vld [vmem:[#allocation17_spill] sm:$0xff] }
 0x52a   :  { %1390 = vmatpush.bf16.msra.mxu3 %v2039_v44  ;;  %v249_v44 = vadd.f32 %v2527_v34, %v2187_v8 }
 0x52e   :  { %1391 = vmatpush.bf16.msra.mxu3 %v2045_v53 }
 0x532   :  { %1392 = vmatpush.bf16.msra.mxu3 %v2051_v62 }
 0x536   :  { %1393 = vmatpush.bf16.msra.mxu3 %v2066_v15 }
 0x53a   :  { %1394 = vmatpush.bf16.msra.mxu3 %v2074_v24 }
 0x53e   :  { %1395 = vmatpush.bf16.msra.mxu3 %v2094_v55 }
 0x59e   :  { %v1196_v19 = vpop.f32.mrf.mxu0 }
 0x59f   :  { %v1237_v7 = vadd.f32 %v1196_v19, %v283_v52  ;;  %v1209_v26 = vpop.f32.mrf.mxu1 }
 0x5a0   :  { %v1257_v28 = vadd.f32 %v2459_v5, %v1209_v26 }
 0x5a1   :  { %v1671_v11 = vmul.f32 -1.442695, %v1237_v7 }
 0x5a3   :  { %1798 = vpow2.f32 %v1671_v11 }
 0x5a4   :  { %v1183_v53 = vpop.f32.mrf.mxu3 }
 0x5a5   :  { %v1217_v17 = vadd.f32 %v1183_v53, %v249_v44 }
 0x5a6   :  { %v1198_v62 = vpop.f32.mrf.mxu0 }
 0x5a7   :  { %v1670_v25 = vmul.f32 -1.442695, %v1217_v17  ;;  %v1211_v15 = vpop.f32.mrf.mxu1 }
 0x5a9   :  { %v1799_v32 = vpop.eup %1798  ;;  %1800 = vpow2.f32 %v1670_v25 }
 0x5aa   :  { %v1241_v24 = vadd.f32 1.0, %v1799_v32 }
 0x5ac   :  { %v1185_v55 = vpop.f32.mrf.mxu3  ;;  %1802 = vrcp.f32 %v1241_v24  ;;  %v1253_v3 = vand.u32 2147483648, %v1241_v24  ;;  %vm1247_vm14 = vweird.f32 %v1241_v24  ;;  %v1251_v13 = vand.u32 2147483647, %v1241_v24 }
 0x5ae   :  { %v1254_v37 = vor.u32 1.1754944e-38, %v1253_v3  ;;  %vm1252_vm0 = vcmp.eq.f32.partialorder %v1251_v13, 8.507059e+37  ;;  %v2532_v13 = vld [vmem:[#allocation19_spill] sm:$0xff] }
 0x5af   :  { %v1801_v41 = vpop.eup %1800 }
 0x5b0   :  { %v1221_v63 = vadd.f32 1.0, %v1801_v41 }
 0x5b2   :  { %1804 = vrcp.f32 %v1221_v63  ;;  %v1803_v6 = vpop.eup %1802  ;;  %v1233_v61 = vand.u32 2147483648, %v1221_v63  ;;  %v1231_v59 = vand.u32 2147483647, %v1221_v63  ;;  %vm1227_vm10 = vweird.f32 %v1221_v63 }
 0x5b3   :  { %v1243_v23 = vmul.f32 %v1803_v6, %v1241_v24  ;;  %vm1248_vm13 = vweird.f32 %v1803_v6 }
 0x5b4   :  { %v1234_v20 = vor.u32 1.1754944e-38, %v1233_v61  ;;  %vm1232_vm12 = vcmp.eq.f32.partialorder %v1231_v59, 8.507059e+37  ;;  %vm1249_vm15 = vmor %vm1247_vm14, %vm1248_vm13 }
 0x5b5   :  { %v1244_v39 = vsub.f32 1.0, %v1243_v23 }
 0x5b7   :  { %v1245_v36 = vmul.f32 %v1803_v6, %v1244_v39 }
 0x5b8   :  { %v1805_v50 = vpop.eup %1804 }
 0x5b9   :  { %v1223_v35 = vmul.f32 %v1805_v50, %v1221_v63  ;;  %vm1228_vm9 = vweird.f32 %v1805_v50  ;;  %v1246_v16 = vadd.f32 %v1803_v6, %v1245_v36 }
 0x5ba   :  { %vm1229_vm11 = vmor %vm1227_vm10, %vm1228_vm9 }
 0x5bb   :  { %v1224_v45 = vsub.f32 1.0, %v1223_v35  ;;  %v1250_v2 = vsel %vm1249_vm15, %v1803_v6, %v1246_v16 }
 0x5bc   :  { %v1255_v29 = vsel %vm1252_vm0, %v1254_v37, %v1250_v2 }
 0x5bd   :  { %v1225_v56 = vmul.f32 %v1805_v50, %v1224_v45  ;;  %v1261_v38 = vsub.f32 1.0, %v1255_v29  ;;  %v1263_v40 = vmul.f32 %v1255_v29, %v2465_v60  ;;  %v2531_v45 = vld [vmem:[#allocation25_spill] sm:$0xff] }
 0x5be   :  { %v320_v61 = vadd.f32 %v2531_v45, %v2205_v58 }
 0x5bf   :  { %v1226_v4 = vadd.f32 %v1805_v50, %v1225_v56 }
 0x5c1   :  { %v1230_v54 = vsel %vm1229_vm11, %v1805_v50, %v1226_v4 }
 0x5c2   :  { %v1235_v51 = vsel %vm1232_vm12, %v1234_v20, %v1230_v54 }
 0x5c3   :  { %v1258_v46 = vmul.f32 %v1257_v28, %v1235_v51 }
 0x5c5   :  { %v1259_v27 = vadd.f32 %v1258_v46, %v317_v22 }
 0x5c7   :  { %1806 = vtanh.f32 %v1259_v27  ;;  %v254_v27 = vadd.f32 %v2532_v13, %v2187_v8 }
 0x5cd   :  { %v1807_v1 = vpop.eup %1806 }
 0x5ce   :  { %v1262_v43 = vmul.f32 %v1807_v1, %v1261_v38  ;;  %v2533_v38 = vld [vmem:[#allocation26_spill] sm:$0xff] }
 0x5cf   :  { %v288_v1 = vadd.f32 %v2533_v38, %v2194_v18 }
 0x5d0   :  { %v1264_v42 = vadd.f32 %v1263_v40, %v1262_v43 }
 0x5d2   :  { %v1265_v31 = vpack.c.bf16 %v1264_v42, %v1264_v42 }
 0x5d4   :  { %1267 = vst [vmem:[#allocation11 + $0x1c] sm:$0xf] %v1265_v31  ;;  %1276 = vmatmul.bf16.vlgmr.msra.gmra.mxu2 %v1265_v31  ;;  %1289 = vmatmul.bf16.vlgmr.msrb.gmra.mxu3 %v1265_v31 }
 0x5d5   :  { %1302 = vmatmul.bf16.vlgmr.msrb.gmra.mxu0 %v1265_v31 }
 0x652   :  { %v1303_v47 = vpop.f32.mrf.mxu0 }
 0x653   :  { %v1351_v23 = vadd.f32 %v2459_v5, %v1303_v47 }
 0x657   :  { %v1277_v12 = vpop.f32.mrf.mxu2  ;;  %v1290_v49 = vpop.f32.mrf.mxu3 }
 0x658   :  { %v1311_v9 = vadd.f32 %v1277_v12, %v252_v30  ;;  %v1331_v21 = vadd.f32 %v1290_v49, %v286_v48 }
 0x65a   :  { %v1672_v33 = vmul.f32 -1.442695, %v1311_v9  ;;  %v1673_v14 = vmul.f32 -1.442695, %v1331_v21  ;;  %v1305_v60 = vpop.f32.mrf.mxu0 }
 0x65c   :  { %1808 = vpow2.f32 %v1672_v33 }
 0x65d   :  { %1810 = vpow2.f32 %v1673_v14 }
 0x65f   :  { %v1279_v52 = vpop.f32.mrf.mxu2  ;;  %v1292_v19 = vpop.f32.mrf.mxu3 }
 0x662   :  { %v1809_v7 = vpop.eup %1808 }
 0x663   :  { %v1811_v26 = vpop.eup %1810  ;;  %v1315_v11 = vadd.f32 1.0, %v1809_v7 }
 0x664   :  { %v1335_v34 = vadd.f32 1.0, %v1811_v26 }
 0x665   :  { %1812 = vrcp.f32 %v1315_v11  ;;  %v1327_v15 = vand.u32 2147483648, %v1315_v11  ;;  %v1325_v55 = vand.u32 2147483647, %v1315_v11  ;;  %vm1321_vm2 = vweird.f32 %v1315_v11 }
 0x666   :  { %1814 = vrcp.f32 %v1335_v34  ;;  %v1347_v59 = vand.u32 2147483648, %v1335_v34  ;;  %vm1341_vm6 = vweird.f32 %v1335_v34  ;;  %v1345_v36 = vand.u32 2147483647, %v1335_v34 }
 0x667   :  { %v1328_v6 = vor.u32 1.1754944e-38, %v1327_v15  ;;  %vm1326_vm4 = vcmp.eq.f32.partialorder %v1325_v55, 8.507059e+37 }
 0x668   :  { %v1348_v28 = vor.u32 1.1754944e-38, %v1347_v59  ;;  %vm1346_vm8 = vcmp.eq.f32.partialorder %v1345_v36, 8.507059e+37 }
 0x66b   :  { %v1813_v44 = vpop.eup %1812 }
 0x66c   :  { %v1815_v53 = vpop.eup %1814  ;;  %v1317_v17 = vmul.f32 %v1813_v44, %v1315_v11  ;;  %vm1322_vm1 = vweird.f32 %v1813_v44 }
 0x66d   :  { %v1337_v62 = vmul.f32 %v1815_v53, %v1335_v34  ;;  %vm1323_vm3 = vmor %vm1321_vm2, %vm1322_vm1  ;;  %vm1342_vm5 = vweird.f32 %v1815_v53 }
 0x66e   :  { %v1318_v25 = vsub.f32 1.0, %v1317_v17  ;;  %vm1343_vm7 = vmor %vm1341_vm6, %vm1342_vm5 }
 0x66f   :  { %v1338_v32 = vsub.f32 1.0, %v1337_v62 }
 0x670   :  { %v1319_v24 = vmul.f32 %v1813_v44, %v1318_v25 }
 0x671   :  { %v1339_v41 = vmul.f32 %v1815_v53, %v1338_v32 }
 0x672   :  { %v1320_v63 = vadd.f32 %v1813_v44, %v1319_v24 }
 0x673   :  { %v1340_v39 = vadd.f32 %v1815_v53, %v1339_v41 }
 0x674   :  { %v1324_v50 = vsel %vm1323_vm3, %v1813_v44, %v1320_v63  ;;  %v2534_v44 = vld [vmem:[#allocation27_spill] sm:$0xff] }
 0x675   :  { %v1329_v35 = vsel %vm1326_vm4, %v1328_v6, %v1324_v50  ;;  %v1344_v20 = vsel %vm1343_vm7, %v1815_v53, %v1340_v39  ;;  %v322_v53 = vadd.f32 %v2534_v44, %v2205_v58 }
 0x676   :  { %v1352_v56 = vmul.f32 %v1351_v23, %v1329_v35  ;;  %v1349_v54 = vsel %vm1346_vm8, %v1348_v28, %v1344_v20 }
 0x677   :  { %v1355_v51 = vsub.f32 1.0, %v1349_v54  ;;  %v1357_v22 = vmul.f32 %v1349_v54, %v1264_v42 }
 0x678   :  { %v1353_v4 = vadd.f32 %v1352_v56, %v320_v61 }
 0x67a   :  { %1816 = vtanh.f32 %v1353_v4 }
 0x680   :  { %v1817_v16 = vpop.eup %1816 }
 0x681   :  { %v1356_v0 = vmul.f32 %v1817_v16, %v1355_v51 }
 0x683   :  { %v1358_v3 = vadd.f32 %v1357_v22, %v1356_v0 }
 0x685   :  { %v1359_v46 = vpack.c.bf16 %v1358_v3, %v1358_v3 }
 0x687   :  { %1361 = vst [vmem:[#allocation11 + $0x20] sm:$0xf] %v1359_v46  ;;  %1370 = vmatmul.bf16.vlgmr.msrb.gmra.mxu1 %v1359_v46  ;;  %1383 = vmatmul.bf16.vlgmr.msrb.gmra.mxu2 %v1359_v46 }
 0x688   :  { %1396 = vmatmul.bf16.vlgmr.msra.gmra.mxu3 %v1359_v46 }
 0x704   :  { %v1371_v2 = vpop.f32.mrf.mxu1 }
 0x705   :  { %v1405_v37 = vadd.f32 %v1371_v2, %v254_v27 }
 0x707   :  { %v1674_v29 = vmul.f32 -1.442695, %v1405_v37 }
 0x709   :  { %1818 = vpow2.f32 %v1674_v29 }
 0x70a   :  { %v1384_v43 = vpop.f32.mrf.mxu2 }
 0x70b   :  { %v1425_v40 = vadd.f32 %v1384_v43, %v288_v1  ;;  %v1397_v31 = vpop.f32.mrf.mxu3 }
 0x70c   :  { %v1373_v42 = vpop.f32.mrf.mxu1  ;;  %v1445_v34 = vadd.f32 %v2459_v5, %v1397_v31 }
 0x70d   :  { %v1675_v47 = vmul.f32 -1.442695, %v1425_v40 }
 0x70f   :  { %v1819_v10 = vpop.eup %1818  ;;  %1820 = vpow2.f32 %v1675_v47 }
 0x710   :  { %v1409_v30 = vadd.f32 1.0, %v1819_v10 }
 0x712   :  { %1822 = vrcp.f32 %v1409_v30  ;;  %v1386_v57 = vpop.f32.mrf.mxu2  ;;  %v1421_v33 = vand.u32 2147483648, %v1409_v30  ;;  %v1419_v14 = vand.u32 2147483647, %v1409_v30  ;;  %vm1415_vm10 = vweird.f32 %v1409_v30 }
 0x713   :  { %v1399_v48 = vpop.f32.mrf.mxu3 }
 0x714   :  { %v1422_v7 = vor.u32 1.1754944e-38, %v1421_v33  ;;  %vm1420_vm12 = vcmp.eq.f32.partialorder %v1419_v14, 8.507059e+37 }
 0x715   :  { %v1821_v12 = vpop.eup %1820 }
 0x716   :  { %v1429_v8 = vadd.f32 1.0, %v1821_v12 }
 0x718   :  { %v1823_v49 = vpop.eup %1822  ;;  %1824 = vrcp.f32 %v1429_v8  ;;  %v1441_v25 = vand.u32 2147483648, %v1429_v8  ;;  %v1439_v32 = vand.u32 2147483647, %v1429_v8  ;;  %vm1435_vm14 = vweird.f32 %v1429_v8 }
 0x719   :  { %v1411_v9 = vmul.f32 %v1823_v49, %v1409_v30  ;;  %vm1416_vm9 = vweird.f32 %v1823_v49 }
 0x71a   :  { %vm1417_vm11 = vmor %vm1415_vm10, %vm1416_vm9  ;;  %v1442_v41 = vor.u32 1.1754944e-38, %v1441_v25  ;;  %vm1440_vm0 = vcmp.eq.f32.partialorder %v1439_v32, 8.507059e+37 }
 0x71b   :  { %v1412_v21 = vsub.f32 1.0, %v1411_v9 }
 0x71d   :  { %v1413_v18 = vmul.f32 %v1823_v49, %v1412_v21 }
 0x71e   :  { %v1825_v60 = vpop.eup %1824 }
 0x71f   :  { %v1431_v52 = vmul.f32 %v1825_v60, %v1429_v8  ;;  %v1414_v19 = vadd.f32 %v1823_v49, %v1413_v18  ;;  %vm1436_vm13 = vweird.f32 %v1825_v60 }
 0x720   :  { %vm1437_vm15 = vmor %vm1435_vm14, %vm1436_vm13 }
 0x721   :  { %v1432_v26 = vsub.f32 1.0, %v1431_v52  ;;  %v1418_v11 = vsel %vm1417_vm11, %v1823_v49, %v1414_v19 }
 0x722   :  { %v1423_v17 = vsel %vm1420_vm12, %v1422_v7, %v1418_v11 }
 0x723   :  { %v1433_v62 = vmul.f32 %v1825_v60, %v1432_v26  ;;  %v1446_v15 = vmul.f32 %v1445_v34, %v1423_v17 }
 0x725   :  { %v1434_v24 = vadd.f32 %v1825_v60, %v1433_v62  ;;  %v1447_v55 = vadd.f32 %v1446_v15, %v322_v53 }
 0x727   :  { %v1438_v63 = vsel %vm1437_vm15, %v1825_v60, %v1434_v24  ;;  %1826 = vtanh.f32 %v1447_v55 }
 0x728   :  { %v1443_v6 = vsel %vm1440_vm0, %v1442_v41, %v1438_v63 }
 0x729   :  { %v1449_v23 = vsub.f32 1.0, %v1443_v6  ;;  %v1451_v35 = vmul.f32 %v1443_v6, %v1358_v3 }
 0x72d   :  { %v1827_v5 = vpop.eup %1826 }
 0x72e   :  { %v1450_v50 = vmul.f32 %v1827_v5, %v1449_v23 }
 0x730   :  { %v1452_v58 = vadd.f32 %v1451_v35, %v1450_v50 }
 0x732   :  { %v1453_v39 = vpack.c.bf16 %v1452_v58, %v1452_v58 }
 0x734   :  { %1455 = vst [vmem:[#allocation11 + $0x24] sm:$0xf] %v1453_v39 }
 0x735   :  { %1468 = dma.vmem_to_hbm [thread:$0]  %s1461_s17, 640, %s1463_s20, [#allocation5], %s1961_s30, %s1961_s30, %s1962_s6  }
 0x736   :  { %1955 = dma.done.wait [#allocation5], 640  }
 0x737   :  { %1956 = vsyncadd [#allocation5], 4294966656 }
 0x738   :  { %1473 = vsyncpa [#allocation4], 1 }
 0x739   :  { %1474 = vsyncpa [#allocation7], 1 }
 0x73a   :  { %1475 = vsyncpa [#allocation10], 1 }
 0x73b   :  { %1476 = vsyncpa [#allocation5], 1 }

</bundles_post_ra>
